<compile_context>
chip_gen: v6e
topology: v6e:2x2x1
jax: 0.10.0
libtpu: 0.0.40
codegen_flags: <defaults>
</compile_context>

<pallas_src>
import math
from functools import partial

import numpy as np
import jax
import jax.numpy as jnp
from jax.experimental import pallas as pl
from jax.experimental.pallas import tpu as pltpu


# ----------------------------- config ---------------------------------------
class Cfg:
    dim = 32
    n_layers = 2
    n_heads = 4
    n_kv_heads = 2
    vocab_size = 64
    multiple_of = 16
    ffn_dim_multiplier = None
    norm_eps = 1e-5
    max_batch_size = 2
    max_seq_len = 16

    @property
    def head_dim(self):
        return self.dim // self.n_heads

    @property
    def hidden_dim(self):
        hd = 4 * self.dim
        hd = int(2 * hd / 3)
        if self.ffn_dim_multiplier is not None:
            hd = int(self.ffn_dim_multiplier * hd)
        return self.multiple_of * ((hd + self.multiple_of - 1) // self.multiple_of)

    @property
    def vocab_padded(self):
        return ((self.vocab_size + 127) // 128) * 128


# --------------------------- fused Pallas kernel -----------------------------
def _fused_llama_kernel(
    # scalar (SMEM)
    sp_ref,
    # tensors (VMEM)
    h_ref, rq_ref, rk_ref, ek_ref, eht_ref,
    wqkv_ref, wo_ref, w13_ref, w2_ref,
    attn_n_ref, ffn_n_ref, norm_w_ref, wout_ref, bout_ref,
    ck_in_ref, cv_in_ref,
    # outputs (VMEM)
    logits_ref, ck_out_ref, cv_out_ref,
    *, n_layers, n_heads, n_kv_heads, head_dim, eps,
):
    sp = sp_ref[0]                                  # start_pos (dynamic scalar)
    B = h_ref.shape[0]
    QD = n_heads * head_dim
    KVD = n_kv_heads * head_dim
    scale = 1.0 / math.sqrt(head_dim)

    # Carry the cache forward; the new token's K/V row is stored below per layer.
    ck_out_ref[...] = ck_in_ref[...]
    cv_out_ref[...] = cv_in_ref[...]

    rq = rq_ref[...]        # (QD, QD)  RoPE rotation (block-diag, query heads)
    rk = rk_ref[...]        # (KVD, KVD) RoPE rotation (kv heads)
    ek = ek_ref[...]        # (KVD, QD)  GQA expansion: repeat_kv in lane space
    eht = eht_ref[...]      # (nH, QD)   per-head lane mask

    def rms(x, w):
        ms = jnp.mean(x * x, axis=-1, keepdims=True)
        return (x * jax.lax.rsqrt(ms + eps)) * w

    h = h_ref[...].astype(jnp.float32)              # (B, D) residual stream, stays on-chip

    for l in range(n_layers):
        # ------------------------- attention -------------------------
        xn = rms(h, attn_n_ref[l])
        qkv = jnp.dot(xn, wqkv_ref[l], preferred_element_type=jnp.float32)      # (B, QD+2*KVD)
        xq = jnp.dot(qkv[:, :QD], rq, preferred_element_type=jnp.float32)       # RoPE(q)
        xk = jnp.dot(qkv[:, QD:QD + KVD], rk, preferred_element_type=jnp.float32)  # RoPE(k)
        xv = qkv[:, QD + KVD:]

        # write the new token's K/V at position start_pos (in-place row store)
        for b in range(B):
            ck_out_ref[l, b, pl.ds(sp, 1), :] = xk[b:b + 1, :]
            cv_out_ref[l, b, pl.ds(sp, 1), :] = xv[b:b + 1, :]

        outs = []
        for b in range(B):
            k_b = ck_out_ref[l, b]                                               # (T, KVD)
            v_b = cv_out_ref[l, b]                                               # (T, KVD)
            k_t = jnp.dot(k_b, ek, preferred_element_type=jnp.float32)           # (T, QD)
            v_t = jnp.dot(v_b, ek, preferred_element_type=jnp.float32)           # (T, QD)
            q_exp = eht * xq[b:b + 1, :]                                         # (nH, QD)
            scores = jax.lax.dot_general(
                q_exp, k_t, (((1,), (1,)), ((), ())),
                preferred_element_type=jnp.float32) * scale                      # (nH, T)
            t_ids = jax.lax.broadcasted_iota(jnp.int32, scores.shape, 1)
            scores = jnp.where(t_ids <= sp, scores, -1e30)                       # length mask
            m = jnp.max(scores, axis=-1, keepdims=True)
            e = jnp.exp(scores - m)
            p = e * pl.reciprocal(jnp.sum(e, axis=-1, keepdims=True), approx=True)
            o_full = jnp.dot(p, v_t, preferred_element_type=jnp.float32)         # (nH, QD)
            outs.append(jnp.sum(o_full * eht, axis=0, keepdims=True))            # (1, QD)
        attn = jnp.concatenate(outs, axis=0)                                     # (B, QD)
        h = h + jnp.dot(attn, wo_ref[l], preferred_element_type=jnp.float32)

        # ------------------------- SwiGLU FFN -------------------------
        hn = rms(h, ffn_n_ref[l])
        h13 = jnp.dot(hn, w13_ref[l], preferred_element_type=jnp.float32)        # (B, 2*H)
        Hf = h13.shape[-1] // 2
        h1 = h13[:, :Hf]
        h3 = h13[:, Hf:]
        gate = h1 * jax.nn.sigmoid(h1)                                           # SiLU
        h = h + jnp.dot(gate * h3, w2_ref[l], preferred_element_type=jnp.float32)

    # ---------------- final norm + lane-dense (padded) logits ----------------
    hn = rms(h, norm_w_ref[...])
    logits_ref[...] = (
        jnp.dot(hn, wout_ref[...], preferred_element_type=jnp.float32) + bout_ref[...]
    ).astype(logits_ref.dtype)


# ------------------------------ JAX wrapper ----------------------------------
def rope_matrix(head_dim, pos, theta=10000.0):
    """(head_dim, head_dim) rotation matrix R so that  rope(x) = x @ R  (consecutive pairs)."""
    half = head_dim // 2
    inv = 1.0 / (theta ** (jnp.arange(0, head_dim, 2, dtype=jnp.float32) / head_dim))
    ang = jnp.asarray(pos, jnp.float32) * inv
    c, s = jnp.cos(ang), jnp.sin(ang)
    idx = jnp.arange(half)
    R = jnp.zeros((head_dim, head_dim), jnp.float32)
    R = R.at[2 * idx, 2 * idx].set(c)
    R = R.at[2 * idx, 2 * idx + 1].set(s)
    R = R.at[2 * idx + 1, 2 * idx].set(-s)
    R = R.at[2 * idx + 1, 2 * idx + 1].set(c)
    return R


def transformer_forward(params, tokens, start_pos, cache_k, cache_v, cfg):
    B, S = tokens.shape
    assert S == 1, "Only one token at a time (KV-cache decode)."
    D, nH, nKV, Dh = cfg.dim, cfg.n_heads, cfg.n_kv_heads, cfg.head_dim
    L, V, Vp = cfg.n_layers, cfg.vocab_size, cfg.vocab_padded

    # TODO(synk): token-embedding gather stays in plain JAX (tiny gather, no clean Pallas win).
    h0 = params["tok_emb"][tokens[:, 0]]                        # (B, D)

    # Position-dependent RoPE rotation, applied in-kernel as one matmul per projection.
    R = rope_matrix(Dh, start_pos)
    rq = jnp.kron(jnp.eye(nH, dtype=jnp.float32), R)            # (nH*Dh, nH*Dh)
    rk = jnp.kron(jnp.eye(nKV, dtype=jnp.float32), R)           # (nKV*Dh, nKV*Dh)

    sp = jnp.reshape(jnp.asarray(start_pos, jnp.int32), (1,))

    vspec = pl.BlockSpec(memory_space=pltpu.MemorySpace.VMEM)
    sspec = pl.BlockSpec(memory_space=pltpu.MemorySpace.SMEM)

    kernel = partial(
        _fused_llama_kernel,
        n_layers=L, n_heads=nH, n_kv_heads=nKV, head_dim=Dh, eps=cfg.norm_eps,
    )

    # TODO(synk): at real model scale alias the KV cache in/out (input_output_aliases, P8)
    # instead of round-tripping it; at ~4 KiB/layer the copy is negligible here.
    logits_pad, ck_new, cv_new = pl.pallas_call(
        kernel,
        out_shape=(
            jax.ShapeDtypeStruct((B, Vp), jnp.float32),
            jax.ShapeDtypeStruct(cache_k.shape, cache_k.dtype),
            jax.ShapeDtypeStruct(cache_v.shape, cache_v.dtype),
        ),
        in_specs=[sspec] + [vspec] * 16,
        out_specs=(vspec, vspec, vspec),
    )(
        sp, h0, rq, rk, params["gqa_ek"], params["gqa_eh"],
        params["wqkv"], params["wo"], params["w13"], params["w2"],
        params["attn_norm"], params["ffn_norm"], params["norm_w"],
        params["out_w"], params["out_b"],
        cache_k, cache_v,
    )
    logits = logits_pad[:, :V].reshape(B, S, V)
    return logits, ck_new, cv_new


# ------------------------- deterministic params ------------------------------
def init_params(cfg, key):
    D, H, V, Vp = cfg.dim, cfg.hidden_dim, cfg.vocab_size, cfg.vocab_padded
    nH, nKV, Dh, L = cfg.n_heads, cfg.n_kv_heads, cfg.head_dim, cfg.n_layers
    n_rep = nH // nKV
    keys = jax.random.split(key, 2 + L)

    out_w = jax.random.normal(keys[1], (D, V), jnp.float32) * 0.02
    out_w_pad = jnp.zeros((D, Vp), jnp.float32).at[:, :V].set(out_w)

    wqkv, wo, w13, w2 = [], [], [], []
    for li in range(L):
        lk = jax.random.split(keys[2 + li], 7)
        wq = jax.random.normal(lk[0], (D, nH * Dh), jnp.float32) * 0.05
        wk = jax.random.normal(lk[1], (D, nKV * Dh), jnp.float32) * 0.05
        wv = jax.random.normal(lk[2], (D, nKV * Dh), jnp.float32) * 0.05
        wqkv.append(jnp.concatenate([wq, wk, wv], axis=1))
        wo.append(jax.random.normal(lk[3], (nH * Dh, D), jnp.float32) * 0.05)
        w1 = jax.random.normal(lk[4], (D, H), jnp.float32) * 0.05
        w3 = jax.random.normal(lk[5], (D, H), jnp.float32) * 0.05
        w13.append(jnp.concatenate([w1, w3], axis=1))
        w2.append(jax.random.normal(lk[6], (H, D), jnp.float32) * 0.05)

    # GQA selection matrices (constants): ek expands KV lanes per query head
    # (repeat_kv done by the MXU), eh masks each query head's lane slot.
    ek = np.zeros((nKV * Dh, nH * Dh), np.float32)
    eh = np.zeros((nH, nH * Dh), np.float32)
    for h in range(nH):
        kv = h // n_rep
        eh[h, h * Dh:(h + 1) * Dh] = 1.0
        for d in range(Dh):
            ek[kv * Dh + d, h * Dh + d] = 1.0

    return {
        "tok_emb": jax.random.normal(keys[0], (V, D), jnp.float32) * 0.02,
        "norm_w": jnp.ones((1, D), jnp.float32),
        "out_w": out_w_pad,                         # (D, Vp) vocab padded to 128 lanes
        "out_b": jnp.zeros((1, Vp), jnp.float32),
        "wqkv": jnp.stack(wqkv),                    # (L, D, (nH+2*nKV)*Dh)
        "wo": jnp.stack(wo),                        # (L, nH*Dh, D)
        "w13": jnp.stack(w13),                      # (L, D, 2*H)
        "w2": jnp.stack(w2),                        # (L, H, D)
        "attn_norm": jnp.ones((L, 1, D), jnp.float32),
        "ffn_norm": jnp.ones((L, 1, D), jnp.float32),
        "gqa_ek": jnp.asarray(ek),
        "gqa_eh": jnp.asarray(eh),
    }


# ----------------------- pure-JAX reference (validation) ---------------------
def reference_forward(params, tokens, start_pos, cache_k, cache_v, cfg):
    B, S = tokens.shape
    D, nH, nKV, Dh = cfg.dim, cfg.n_heads, cfg.n_kv_heads, cfg.head_dim
    n_rep = nH // nKV
    QD, KVD, V = nH * Dh, nKV * Dh, cfg.vocab_size
    eps = cfg.norm_eps

    def rms(x, w):
        return x * jax.lax.rsqrt(jnp.mean(x * x, -1, keepdims=True) + eps) * w

    R = rope_matrix(Dh, start_pos)
    h = params["tok_emb"][tokens[:, 0]]
    ck, cv = cache_k, cache_v
    T = start_pos + S
    for l in range(cfg.n_layers):
        xn = rms(h, params["attn_norm"][l, 0])
        qkv = xn @ params["wqkv"][l]
        xq = (qkv[:, :QD].reshape(B, nH, Dh) @ R).reshape(B, QD)
        xk = (qkv[:, QD:QD + KVD].reshape(B, nKV, Dh) @ R).reshape(B, KVD)
        xv = qkv[:, QD + KVD:]
        ck = ck.at[l, :B, start_pos].set(xk)
        cv = cv.at[l, :B, start_pos].set(xv)
        keys = jnp.repeat(ck[l, :B, :T].reshape(B, T, nKV, Dh), n_rep, axis=2)
        vals = jnp.repeat(cv[l, :B, :T].reshape(B, T, nKV, Dh), n_rep, axis=2)
        q = xq.reshape(B, nH, Dh)
        sc = jnp.einsum("bhd,bthd->bht", q, keys) / math.sqrt(Dh)
        p = jax.nn.softmax(sc, axis=-1)
        o = jnp.einsum("bht,bthd->bhd", p, vals).reshape(B, QD)
        h = h + o @ params["wo"][l]
        hn = rms(h, params["ffn_norm"][l, 0])
        h13 = hn @ params["w13"][l]
        Hf = h13.shape[-1] // 2
        h = h + (jax.nn.silu(h13[:, :Hf]) * h13[:, Hf:]) @ params["w2"][l]
    hn = rms(h, params["norm_w"][0])
    logits = hn @ params["out_w"] + params["out_b"][0]
    return logits[:, :V].reshape(B, S, V)


if __name__ == "__main__":
    cfg = Cfg()
    key = jax.random.PRNGKey(0)
    pkey, tkey = jax.random.split(key)
    params = init_params(cfg, pkey)

    B = cfg.max_batch_size
    tokens = jax.random.randint(tkey, (B, 1), 0, cfg.vocab_size, dtype=jnp.int32)
    start_pos = 3

    # Fresh zero caches, matching the reference module's just-initialized state;
    # updated caches are returned so subsequent decode steps can thread them.
    kv_shape = (cfg.n_layers, cfg.max_batch_size, cfg.max_seq_len,
                cfg.n_kv_heads * cfg.head_dim)
    cache_k = jnp.zeros(kv_shape, jnp.float32)
    cache_v = jnp.zeros(kv_shape, jnp.float32)

    fwd = jax.jit(partial(transformer_forward, cfg=cfg))
    logits, cache_k_new, cache_v_new = fwd(params, tokens, start_pos, cache_k, cache_v)
    logits = jax.block_until_ready(logits)

    assert logits.shape == (B, 1, cfg.vocab_size)
    assert bool(jnp.all(jnp.isfinite(logits)))

    ref = reference_forward(params, tokens, start_pos, cache_k, cache_v, cfg)
    assert jnp.allclose(logits, ref, atol=2e-2, rtol=2e-2)

    print("KERNEL_OK")
</pallas_src>

<mosaic_0001>
module attributes {stable_mosaic.version = 11 : i64} {
  func.func @_fused_llama_kernel(%arg0: memref<1xi32, #tpu.memory_space<smem>>, %arg1: memref<2x32xf32, #tpu.memory_space<vmem>>, %arg2: memref<32x32xf32, #tpu.memory_space<vmem>>, %arg3: memref<16x16xf32, #tpu.memory_space<vmem>>, %arg4: memref<16x32xf32, #tpu.memory_space<vmem>>, %arg5: memref<4x32xf32, #tpu.memory_space<vmem>>, %arg6: memref<2x32x64xf32, #tpu.memory_space<vmem>>, %arg7: memref<2x32x32xf32, #tpu.memory_space<vmem>>, %arg8: memref<2x32x192xf32, #tpu.memory_space<vmem>>, %arg9: memref<2x96x32xf32, #tpu.memory_space<vmem>>, %arg10: memref<2x1x32xf32, #tpu.memory_space<vmem>>, %arg11: memref<2x1x32xf32, #tpu.memory_space<vmem>>, %arg12: memref<1x32xf32, #tpu.memory_space<vmem>>, %arg13: memref<32x128xf32, #tpu.memory_space<vmem>>, %arg14: memref<1x128xf32, #tpu.memory_space<vmem>>, %arg15: memref<2x2x16x16xf32, #tpu.memory_space<vmem>>, %arg16: memref<2x2x16x16xf32, #tpu.memory_space<vmem>>, %arg17: memref<2x128xf32, #tpu.memory_space<vmem>>, %arg18: memref<2x2x16x16xf32, #tpu.memory_space<vmem>>, %arg19: memref<2x2x16x16xf32, #tpu.memory_space<vmem>>) attributes {dimension_semantics = [], scalar_prefetch = 0 : i64, scratch_operands = 0 : i64, tpu.core_type = #tpu.core_type<tc>} {
    %c0 = arith.constant 0 : index
    %0 = memref.load %arg0[%c0] : memref<1xi32, #tpu.memory_space<smem>>
    %c0_0 = arith.constant 0 : index
    %c0_1 = arith.constant 0 : index
    %c0_2 = arith.constant 0 : index
    %c0_3 = arith.constant 0 : index
    %1 = vector.load %arg15[%c0_0, %c0_1, %c0_2, %c0_3] : memref<2x2x16x16xf32, #tpu.memory_space<vmem>>, vector<2x2x16x16xf32>
    %c0_4 = arith.constant 0 : index
    %c0_5 = arith.constant 0 : index
    %c0_6 = arith.constant 0 : index
    %c0_7 = arith.constant 0 : index
    %2 = vector.load %arg18[%c0_4, %c0_5, %c0_6, %c0_7] : memref<2x2x16x16xf32, #tpu.memory_space<vmem>>, vector<2x2x16x16xf32>
    tpu.vector_store %arg18[%c0_4, %c0_5, %c0_6, %c0_7], %1 {strides = array<i32>} : memref<2x2x16x16xf32, #tpu.memory_space<vmem>>, vector<2x2x16x16xf32>,
    %c0_8 = arith.constant 0 : index
    %c0_9 = arith.constant 0 : index
    %c0_10 = arith.constant 0 : index
    %c0_11 = arith.constant 0 : index
    %3 = vector.load %arg16[%c0_8, %c0_9, %c0_10, %c0_11] : memref<2x2x16x16xf32, #tpu.memory_space<vmem>>, vector<2x2x16x16xf32>
    %c0_12 = arith.constant 0 : index
    %c0_13 = arith.constant 0 : index
    %c0_14 = arith.constant 0 : index
    %c0_15 = arith.constant 0 : index
    %4 = vector.load %arg19[%c0_12, %c0_13, %c0_14, %c0_15] : memref<2x2x16x16xf32, #tpu.memory_space<vmem>>, vector<2x2x16x16xf32>
    tpu.vector_store %arg19[%c0_12, %c0_13, %c0_14, %c0_15], %3 {strides = array<i32>} : memref<2x2x16x16xf32, #tpu.memory_space<vmem>>, vector<2x2x16x16xf32>,
    %c0_16 = arith.constant 0 : index
    %c0_17 = arith.constant 0 : index
    %5 = vector.load %arg2[%c0_16, %c0_17] : memref<32x32xf32, #tpu.memory_space<vmem>>, vector<32x32xf32>
    %c0_18 = arith.constant 0 : index
    %c0_19 = arith.constant 0 : index
    %6 = vector.load %arg3[%c0_18, %c0_19] : memref<16x16xf32, #tpu.memory_space<vmem>>, vector<16x16xf32>
    %c0_20 = arith.constant 0 : index
    %c0_21 = arith.constant 0 : index
    %7 = vector.load %arg4[%c0_20, %c0_21] : memref<16x32xf32, #tpu.memory_space<vmem>>, vector<16x32xf32>
    %c0_22 = arith.constant 0 : index
    %c0_23 = arith.constant 0 : index
    %8 = vector.load %arg5[%c0_22, %c0_23] : memref<4x32xf32, #tpu.memory_space<vmem>>, vector<4x32xf32>
    %c0_24 = arith.constant 0 : index
    %c0_25 = arith.constant 0 : index
    %9 = vector.load %arg1[%c0_24, %c0_25] : memref<2x32xf32, #tpu.memory_space<vmem>>, vector<2x32xf32>
    %c0_26 = arith.constant 0 : index
    %c0_27 = arith.constant 0 : index
    %c0_28 = arith.constant 0 : index
    %10 = vector.load %arg10[%c0_26, %c0_27, %c0_28] : memref<2x1x32xf32, #tpu.memory_space<vmem>>, vector<1x1x32xf32>
    %11 = vector.shape_cast %10 : vector<1x1x32xf32> to vector<1x32xf32>
    %12 = arith.mulf %9, %9 : vector<2x32xf32>
    %cst = arith.constant dense<0.000000e+00> : vector<2xf32>
    %13 = vector.multi_reduction <add>, %12, %cst [1] : vector<2x32xf32> to vector<2xf32>
    %14 = vector.shape_cast %13 : vector<2xf32> to vector<2x1xf32>
    %cst_29 = arith.constant 3.200000e+01 : f32
    %15 = vector.broadcast %cst_29 : f32 to vector<2x1xf32>
    %16 = arith.divf %14, %15 : vector<2x1xf32>
    %cst_30 = arith.constant 9.99999974E-6 : f32
    %17 = vector.broadcast %cst_30 : f32 to vector<2x1xf32>
    %18 = arith.addf %16, %17 : vector<2x1xf32>
    %19 = math.rsqrt %18 : vector<2x1xf32>
    %20 = vector.broadcast %19 : vector<2x1xf32> to vector<2x32xf32>
    %21 = arith.mulf %9, %20 : vector<2x32xf32>
    %22 = vector.broadcast %11 : vector<1x32xf32> to vector<2x32xf32>
    %23 = arith.mulf %21, %22 : vector<2x32xf32>
    %c0_31 = arith.constant 0 : index
    %c0_32 = arith.constant 0 : index
    %c0_33 = arith.constant 0 : index
    %24 = vector.load %arg6[%c0_31, %c0_32, %c0_33] : memref<2x32x64xf32, #tpu.memory_space<vmem>>, vector<1x32x64xf32>
    %25 = vector.shape_cast %24 : vector<1x32x64xf32> to vector<32x64xf32>
    %cst_34 = arith.constant dense<0.000000e+00> : vector<2x64xf32>
    %26 = tpu.matmul %23, %25, %cst_34 {dimension_numbers = #tpu.dot_dimension_numbers<[1], [0], [0], [1], [0, 0, 1, 1], [], []>} : vector<2x32xf32>, vector<32x64xf32>, vector<2x64xf32> -> vector<2x64xf32>
    %27 = vector.extract_strided_slice %26 {offsets = [0, 0], sizes = [2, 32], strides = [1, 1]} : vector<2x64xf32> to vector<2x32xf32>
    %cst_35 = arith.constant dense<0.000000e+00> : vector<2x32xf32>
    %28 = tpu.matmul %27, %5, %cst_35 {dimension_numbers = #tpu.dot_dimension_numbers<[1], [0], [0], [1], [0, 0, 1, 1], [], []>} : vector<2x32xf32>, vector<32x32xf32>, vector<2x32xf32> -> vector<2x32xf32>
    %29 = vector.extract_strided_slice %26 {offsets = [0, 32], sizes = [2, 16], strides = [1, 1]} : vector<2x64xf32> to vector<2x16xf32>
    %cst_36 = arith.constant dense<0.000000e+00> : vector<2x16xf32>
    %30 = tpu.matmul %29, %6, %cst_36 {dimension_numbers = #tpu.dot_dimension_numbers<[1], [0], [0], [1], [0, 0, 1, 1], [], []>} : vector<2x16xf32>, vector<16x16xf32>, vector<2x16xf32> -> vector<2x16xf32>
    %31 = vector.extract_strided_slice %26 {offsets = [0, 48], sizes = [2, 16], strides = [1, 1]} : vector<2x64xf32> to vector<2x16xf32>
    %32 = vector.extract_strided_slice %30 {offsets = [0, 0], sizes = [1, 16], strides = [1, 1]} : vector<2x16xf32> to vector<1x16xf32>
    %c0_37 = arith.constant 0 : index
    %c0_38 = arith.constant 0 : index
    %33 = arith.index_cast %0 : i32 to index
    %c0_39 = arith.constant 0 : index
    %34 = vector.load %arg18[%c0_37, %c0_38, %33, %c0_39] : memref<2x2x16x16xf32, #tpu.memory_space<vmem>>, vector<1x1x1x16xf32>
    %35 = vector.shape_cast %34 : vector<1x1x1x16xf32> to vector<1x16xf32>
    %36 = vector.shape_cast %32 : vector<1x16xf32> to vector<1x1x1x16xf32>
    tpu.vector_store %arg18[%c0_37, %c0_38, %33, %c0_39], %36 {strides = array<i32>} : memref<2x2x16x16xf32, #tpu.memory_space<vmem>>, vector<1x1x1x16xf32>,
    %37 = vector.extract_strided_slice %31 {offsets = [0, 0], sizes = [1, 16], strides = [1, 1]} : vector<2x16xf32> to vector<1x16xf32>
    %c0_40 = arith.constant 0 : index
    %c0_41 = arith.constant 0 : index
    %38 = arith.index_cast %0 : i32 to index
    %c0_42 = arith.constant 0 : index
    %39 = vector.load %arg19[%c0_40, %c0_41, %38, %c0_42] : memref<2x2x16x16xf32, #tpu.memory_space<vmem>>, vector<1x1x1x16xf32>
    %40 = vector.shape_cast %39 : vector<1x1x1x16xf32> to vector<1x16xf32>
    %41 = vector.shape_cast %37 : vector<1x16xf32> to vector<1x1x1x16xf32>
    tpu.vector_store %arg19[%c0_40, %c0_41, %38, %c0_42], %41 {strides = array<i32>} : memref<2x2x16x16xf32, #tpu.memory_space<vmem>>, vector<1x1x1x16xf32>,
    %42 = vector.extract_strided_slice %30 {offsets = [1, 0], sizes = [1, 16], strides = [1, 1]} : vector<2x16xf32> to vector<1x16xf32>
    %c0_43 = arith.constant 0 : index
    %c1 = arith.constant 1 : index
    %43 = arith.index_cast %0 : i32 to index
    %c0_44 = arith.constant 0 : index
    %44 = vector.load %arg18[%c0_43, %c1, %43, %c0_44] : memref<2x2x16x16xf32, #tpu.memory_space<vmem>>, vector<1x1x1x16xf32>
    %45 = vector.shape_cast %44 : vector<1x1x1x16xf32> to vector<1x16xf32>
    %46 = vector.shape_cast %42 : vector<1x16xf32> to vector<1x1x1x16xf32>
    tpu.vector_store %arg18[%c0_43, %c1, %43, %c0_44], %46 {strides = array<i32>} : memref<2x2x16x16xf32, #tpu.memory_space<vmem>>, vector<1x1x1x16xf32>,
    %47 = vector.extract_strided_slice %31 {offsets = [1, 0], sizes = [1, 16], strides = [1, 1]} : vector<2x16xf32> to vector<1x16xf32>
    %c0_45 = arith.constant 0 : index
    %c1_46 = arith.constant 1 : index
    %48 = arith.index_cast %0 : i32 to index
    %c0_47 = arith.constant 0 : index
    %49 = vector.load %arg19[%c0_45, %c1_46, %48, %c0_47] : memref<2x2x16x16xf32, #tpu.memory_space<vmem>>, vector<1x1x1x16xf32>
    %50 = vector.shape_cast %49 : vector<1x1x1x16xf32> to vector<1x16xf32>
    %51 = vector.shape_cast %47 : vector<1x16xf32> to vector<1x1x1x16xf32>
    tpu.vector_store %arg19[%c0_45, %c1_46, %48, %c0_47], %51 {strides = array<i32>} : memref<2x2x16x16xf32, #tpu.memory_space<vmem>>, vector<1x1x1x16xf32>,
    %c0_48 = arith.constant 0 : index
    %c0_49 = arith.constant 0 : index
    %c0_50 = arith.constant 0 : index
    %c0_51 = arith.constant 0 : index
    %52 = vector.load %arg18[%c0_48, %c0_49, %c0_50, %c0_51] : memref<2x2x16x16xf32, #tpu.memory_space<vmem>>, vector<1x1x16x16xf32>
    %53 = vector.shape_cast %52 : vector<1x1x16x16xf32> to vector<16x16xf32>
    %c0_52 = arith.constant 0 : index
    %c0_53 = arith.constant 0 : index
    %c0_54 = arith.constant 0 : index
    %c0_55 = arith.constant 0 : index
    %54 = vector.load %arg19[%c0_52, %c0_53, %c0_54, %c0_55] : memref<2x2x16x16xf32, #tpu.memory_space<vmem>>, vector<1x1x16x16xf32>
    %55 = vector.shape_cast %54 : vector<1x1x16x16xf32> to vector<16x16xf32>
    %cst_56 = arith.constant dense<0.000000e+00> : vector<16x32xf32>
    %56 = tpu.matmul %53, %7, %cst_56 {dimension_numbers = #tpu.dot_dimension_numbers<[1], [0], [0], [1], [0, 0, 1, 1], [], []>} : vector<16x16xf32>, vector<16x32xf32>, vector<16x32xf32> -> vector<16x32xf32>
    %cst_57 = arith.constant dense<0.000000e+00> : vector<16x32xf32>
    %57 = tpu.matmul %55, %7, %cst_57 {dimension_numbers = #tpu.dot_dimension_numbers<[1], [0], [0], [1], [0, 0, 1, 1], [], []>} : vector<16x16xf32>, vector<16x32xf32>, vector<16x32xf32> -> vector<16x32xf32>
    %58 = vector.extract_strided_slice %28 {offsets = [0, 0], sizes = [1, 32], strides = [1, 1]} : vector<2x32xf32> to vector<1x32xf32>
    %59 = vector.broadcast %58 : vector<1x32xf32> to vector<4x32xf32>
    %60 = arith.mulf %8, %59 : vector<4x32xf32>
    %cst_58 = arith.constant dense<0.000000e+00> : vector<4x16xf32>
    %61 = tpu.matmul %60, %56, %cst_58 {dimension_numbers = #tpu.dot_dimension_numbers<[1], [1], [0], [0], [0, 0, 1, 0], [], []>} : vector<4x32xf32>, vector<16x32xf32>, vector<4x16xf32> -> vector<4x16xf32>
    %cst_59 = arith.constant 0.353553385 : f32
    %62 = vector.broadcast %cst_59 : f32 to vector<4x16xf32>
    %63 = arith.mulf %61, %62 : vector<4x16xf32>
    %64 = tpu.iota {dimensions = array<i32: 1>} : vector<4x16xi32>
    %65 = vector.broadcast %0 : i32 to vector<4x16xi32>
    %66 = arith.cmpi sle, %64, %65 : vector<4x16xi32>
    %cst_60 = arith.constant -1.000000e+30 : f32
    %67 = vector.broadcast %cst_60 : f32 to vector<4x16xf32>
    %68 = arith.select %66, %63, %67 : vector<4x16xi1>, vector<4x16xf32>
    %cst_61 = arith.constant dense<0xFF800000> : vector<4xf32>
    %69 = vector.multi_reduction <maximumf>, %68, %cst_61 [1] : vector<4x16xf32> to vector<4xf32>
    %70 = vector.shape_cast %69 : vector<4xf32> to vector<4x1xf32>
    %71 = vector.broadcast %70 : vector<4x1xf32> to vector<4x16xf32>
    %72 = arith.subf %68, %71 : vector<4x16xf32>
    %73 = math.exp %72 : vector<4x16xf32>
    %cst_62 = arith.constant dense<0.000000e+00> : vector<4xf32>
    %74 = vector.multi_reduction <add>, %73, %cst_62 [1] : vector<4x16xf32> to vector<4xf32>
    %75 = vector.shape_cast %74 : vector<4xf32> to vector<4x1xf32>
    %76 = tpu.reciprocal %75 {approx = true} : vector<4x1xf32> -> vector<4x1xf32>
    %77 = vector.broadcast %76 : vector<4x1xf32> to vector<4x16xf32>
    %78 = arith.mulf %73, %77 : vector<4x16xf32>
    %cst_63 = arith.constant dense<0.000000e+00> : vector<4x32xf32>
    %79 = tpu.matmul %78, %57, %cst_63 {dimension_numbers = #tpu.dot_dimension_numbers<[1], [0], [0], [1], [0, 0, 1, 1], [], []>} : vector<4x16xf32>, vector<16x32xf32>, vector<4x32xf32> -> vector<4x32xf32>
    %80 = arith.mulf %79, %8 : vector<4x32xf32>
    %cst_64 = arith.constant dense<0.000000e+00> : vector<32xf32>
    %81 = vector.multi_reduction <add>, %80, %cst_64 [0] : vector<4x32xf32> to vector<32xf32>
    %82 = vector.shape_cast %81 : vector<32xf32> to vector<1x32xf32>
    %c0_65 = arith.constant 0 : index
    %c1_66 = arith.constant 1 : index
    %c0_67 = arith.constant 0 : index
    %c0_68 = arith.constant 0 : index
    %83 = vector.load %arg18[%c0_65, %c1_66, %c0_67, %c0_68] : memref<2x2x16x16xf32, #tpu.memory_space<vmem>>, vector<1x1x16x16xf32>
    %84 = vector.shape_cast %83 : vector<1x1x16x16xf32> to vector<16x16xf32>
    %c0_69 = arith.constant 0 : index
    %c1_70 = arith.constant 1 : index
    %c0_71 = arith.constant 0 : index
    %c0_72 = arith.constant 0 : index
    %85 = vector.load %arg19[%c0_69, %c1_70, %c0_71, %c0_72] : memref<2x2x16x16xf32, #tpu.memory_space<vmem>>, vector<1x1x16x16xf32>
    %86 = vector.shape_cast %85 : vector<1x1x16x16xf32> to vector<16x16xf32>
    %cst_73 = arith.constant dense<0.000000e+00> : vector<16x32xf32>
    %87 = tpu.matmul %84, %7, %cst_73 {dimension_numbers = #tpu.dot_dimension_numbers<[1], [0], [0], [1], [0, 0, 1, 1], [], []>} : vector<16x16xf32>, vector<16x32xf32>, vector<16x32xf32> -> vector<16x32xf32>
    %cst_74 = arith.constant dense<0.000000e+00> : vector<16x32xf32>
    %88 = tpu.matmul %86, %7, %cst_74 {dimension_numbers = #tpu.dot_dimension_numbers<[1], [0], [0], [1], [0, 0, 1, 1], [], []>} : vector<16x16xf32>, vector<16x32xf32>, vector<16x32xf32> -> vector<16x32xf32>
    %89 = vector.extract_strided_slice %28 {offsets = [1, 0], sizes = [1, 32], strides = [1, 1]} : vector<2x32xf32> to vector<1x32xf32>
    %90 = vector.broadcast %89 : vector<1x32xf32> to vector<4x32xf32>
    %91 = arith.mulf %8, %90 : vector<4x32xf32>
    %cst_75 = arith.constant dense<0.000000e+00> : vector<4x16xf32>
    %92 = tpu.matmul %91, %87, %cst_75 {dimension_numbers = #tpu.dot_dimension_numbers<[1], [1], [0], [0], [0, 0, 1, 0], [], []>} : vector<4x32xf32>, vector<16x32xf32>, vector<4x16xf32> -> vector<4x16xf32>
    %cst_76 = arith.constant 0.353553385 : f32
    %93 = vector.broadcast %cst_76 : f32 to vector<4x16xf32>
    %94 = arith.mulf %92, %93 : vector<4x16xf32>
    %95 = tpu.iota {dimensions = array<i32: 1>} : vector<4x16xi32>
    %96 = vector.broadcast %0 : i32 to vector<4x16xi32>
    %97 = arith.cmpi sle, %95, %96 : vector<4x16xi32>
    %cst_77 = arith.constant -1.000000e+30 : f32
    %98 = vector.broadcast %cst_77 : f32 to vector<4x16xf32>
    %99 = arith.select %97, %94, %98 : vector<4x16xi1>, vector<4x16xf32>
    %cst_78 = arith.constant dense<0xFF800000> : vector<4xf32>
    %100 = vector.multi_reduction <maximumf>, %99, %cst_78 [1] : vector<4x16xf32> to vector<4xf32>
    %101 = vector.shape_cast %100 : vector<4xf32> to vector<4x1xf32>
    %102 = vector.broadcast %101 : vector<4x1xf32> to vector<4x16xf32>
    %103 = arith.subf %99, %102 : vector<4x16xf32>
    %104 = math.exp %103 : vector<4x16xf32>
    %cst_79 = arith.constant dense<0.000000e+00> : vector<4xf32>
    %105 = vector.multi_reduction <add>, %104, %cst_79 [1] : vector<4x16xf32> to vector<4xf32>
    %106 = vector.shape_cast %105 : vector<4xf32> to vector<4x1xf32>
    %107 = tpu.reciprocal %106 {approx = true} : vector<4x1xf32> -> vector<4x1xf32>
    %108 = vector.broadcast %107 : vector<4x1xf32> to vector<4x16xf32>
    %109 = arith.mulf %104, %108 : vector<4x16xf32>
    %cst_80 = arith.constant dense<0.000000e+00> : vector<4x32xf32>
    %110 = tpu.matmul %109, %88, %cst_80 {dimension_numbers = #tpu.dot_dimension_numbers<[1], [0], [0], [1], [0, 0, 1, 1], [], []>} : vector<4x16xf32>, vector<16x32xf32>, vector<4x32xf32> -> vector<4x32xf32>
    %111 = arith.mulf %110, %8 : vector<4x32xf32>
    %cst_81 = arith.constant dense<0.000000e+00> : vector<32xf32>
    %112 = vector.multi_reduction <add>, %111, %cst_81 [0] : vector<4x32xf32> to vector<32xf32>
    %113 = vector.shape_cast %112 : vector<32xf32> to vector<1x32xf32>
    %114 = tpu.concatenate %82, %113 in 0 : vector<1x32xf32>, vector<1x32xf32> -> vector<2x32xf32>
    %c0_82 = arith.constant 0 : index
    %c0_83 = arith.constant 0 : index
    %c0_84 = arith.constant 0 : index
    %115 = vector.load %arg7[%c0_82, %c0_83, %c0_84] : memref<2x32x32xf32, #tpu.memory_space<vmem>>, vector<1x32x32xf32>
    %116 = vector.shape_cast %115 : vector<1x32x32xf32> to vector<32x32xf32>
    %cst_85 = arith.constant dense<0.000000e+00> : vector<2x32xf32>
    %117 = tpu.matmul %114, %116, %cst_85 {dimension_numbers = #tpu.dot_dimension_numbers<[1], [0], [0], [1], [0, 0, 1, 1], [], []>} : vector<2x32xf32>, vector<32x32xf32>, vector<2x32xf32> -> vector<2x32xf32>
    %118 = arith.addf %9, %117 : vector<2x32xf32>
    %c0_86 = arith.constant 0 : index
    %c0_87 = arith.constant 0 : index
    %c0_88 = arith.constant 0 : index
    %119 = vector.load %arg11[%c0_86, %c0_87, %c0_88] : memref<2x1x32xf32, #tpu.memory_space<vmem>>, vector<1x1x32xf32>
    %120 = vector.shape_cast %119 : vector<1x1x32xf32> to vector<1x32xf32>
    %121 = arith.mulf %118, %118 : vector<2x32xf32>
    %cst_89 = arith.constant dense<0.000000e+00> : vector<2xf32>
    %122 = vector.multi_reduction <add>, %121, %cst_89 [1] : vector<2x32xf32> to vector<2xf32>
    %123 = vector.shape_cast %122 : vector<2xf32> to vector<2x1xf32>
    %cst_90 = arith.constant 3.200000e+01 : f32
    %124 = vector.broadcast %cst_90 : f32 to vector<2x1xf32>
    %125 = arith.divf %123, %124 : vector<2x1xf32>
    %cst_91 = arith.constant 9.99999974E-6 : f32
    %126 = vector.broadcast %cst_91 : f32 to vector<2x1xf32>
    %127 = arith.addf %125, %126 : vector<2x1xf32>
    %128 = math.rsqrt %127 : vector<2x1xf32>
    %129 = vector.broadcast %128 : vector<2x1xf32> to vector<2x32xf32>
    %130 = arith.mulf %118, %129 : vector<2x32xf32>
    %131 = vector.broadcast %120 : vector<1x32xf32> to vector<2x32xf32>
    %132 = arith.mulf %130, %131 : vector<2x32xf32>
    %c0_92 = arith.constant 0 : index
    %c0_93 = arith.constant 0 : index
    %c0_94 = arith.constant 0 : index
    %133 = vector.load %arg8[%c0_92, %c0_93, %c0_94] : memref<2x32x192xf32, #tpu.memory_space<vmem>>, vector<1x32x192xf32>
    %134 = vector.shape_cast %133 : vector<1x32x192xf32> to vector<32x192xf32>
    %cst_95 = arith.constant dense<0.000000e+00> : vector<2x192xf32>
    %135 = tpu.matmul %132, %134, %cst_95 {dimension_numbers = #tpu.dot_dimension_numbers<[1], [0], [0], [1], [0, 0, 1, 1], [], []>} : vector<2x32xf32>, vector<32x192xf32>, vector<2x192xf32> -> vector<2x192xf32>
    %136 = vector.extract_strided_slice %135 {offsets = [0, 0], sizes = [2, 96], strides = [1, 1]} : vector<2x192xf32> to vector<2x96xf32>
    %137 = vector.extract_strided_slice %135 {offsets = [0, 96], sizes = [2, 96], strides = [1, 1]} : vector<2x192xf32> to vector<2x96xf32>
    %138 = arith.negf %136 : vector<2x96xf32>
    %139 = math.exp %138 : vector<2x96xf32>
    %cst_96 = arith.constant 1.000000e+00 : f32
    %140 = vector.broadcast %cst_96 : f32 to vector<2x96xf32>
    %141 = arith.addf %140, %139 : vector<2x96xf32>
    %142 = arith.divf %140, %141 : vector<2x96xf32>
    %143 = arith.mulf %136, %142 : vector<2x96xf32>
    %144 = arith.mulf %143, %137 : vector<2x96xf32>
    %c0_97 = arith.constant 0 : index
    %c0_98 = arith.constant 0 : index
    %c0_99 = arith.constant 0 : index
    %145 = vector.load %arg9[%c0_97, %c0_98, %c0_99] : memref<2x96x32xf32, #tpu.memory_space<vmem>>, vector<1x96x32xf32>
    %146 = vector.shape_cast %145 : vector<1x96x32xf32> to vector<96x32xf32>
    %cst_100 = arith.constant dense<0.000000e+00> : vector<2x32xf32>
    %147 = tpu.matmul %144, %146, %cst_100 {dimension_numbers = #tpu.dot_dimension_numbers<[1], [0], [0], [1], [0, 0, 1, 1], [], []>} : vector<2x96xf32>, vector<96x32xf32>, vector<2x32xf32> -> vector<2x32xf32>
    %148 = arith.addf %118, %147 : vector<2x32xf32>
    %c1_101 = arith.constant 1 : index
    %c0_102 = arith.constant 0 : index
    %c0_103 = arith.constant 0 : index
    %149 = vector.load %arg10[%c1_101, %c0_102, %c0_103] : memref<2x1x32xf32, #tpu.memory_space<vmem>>, vector<1x1x32xf32>
    %150 = vector.shape_cast %149 : vector<1x1x32xf32> to vector<1x32xf32>
    %151 = arith.mulf %148, %148 : vector<2x32xf32>
    %cst_104 = arith.constant dense<0.000000e+00> : vector<2xf32>
    %152 = vector.multi_reduction <add>, %151, %cst_104 [1] : vector<2x32xf32> to vector<2xf32>
    %153 = vector.shape_cast %152 : vector<2xf32> to vector<2x1xf32>
    %cst_105 = arith.constant 3.200000e+01 : f32
    %154 = vector.broadcast %cst_105 : f32 to vector<2x1xf32>
    %155 = arith.divf %153, %154 : vector<2x1xf32>
    %cst_106 = arith.constant 9.99999974E-6 : f32
    %156 = vector.broadcast %cst_106 : f32 to vector<2x1xf32>
    %157 = arith.addf %155, %156 : vector<2x1xf32>
    %158 = math.rsqrt %157 : vector<2x1xf32>
    %159 = vector.broadcast %158 : vector<2x1xf32> to vector<2x32xf32>
    %160 = arith.mulf %148, %159 : vector<2x32xf32>
    %161 = vector.broadcast %150 : vector<1x32xf32> to vector<2x32xf32>
    %162 = arith.mulf %160, %161 : vector<2x32xf32>
    %c1_107 = arith.constant 1 : index
    %c0_108 = arith.constant 0 : index
    %c0_109 = arith.constant 0 : index
    %163 = vector.load %arg6[%c1_107, %c0_108, %c0_109] : memref<2x32x64xf32, #tpu.memory_space<vmem>>, vector<1x32x64xf32>
    %164 = vector.shape_cast %163 : vector<1x32x64xf32> to vector<32x64xf32>
    %cst_110 = arith.constant dense<0.000000e+00> : vector<2x64xf32>
    %165 = tpu.matmul %162, %164, %cst_110 {dimension_numbers = #tpu.dot_dimension_numbers<[1], [0], [0], [1], [0, 0, 1, 1], [], []>} : vector<2x32xf32>, vector<32x64xf32>, vector<2x64xf32> -> vector<2x64xf32>
    %166 = vector.extract_strided_slice %165 {offsets = [0, 0], sizes = [2, 32], strides = [1, 1]} : vector<2x64xf32> to vector<2x32xf32>
    %cst_111 = arith.constant dense<0.000000e+00> : vector<2x32xf32>
    %167 = tpu.matmul %166, %5, %cst_111 {dimension_numbers = #tpu.dot_dimension_numbers<[1], [0], [0], [1], [0, 0, 1, 1], [], []>} : vector<2x32xf32>, vector<32x32xf32>, vector<2x32xf32> -> vector<2x32xf32>
    %168 = vector.extract_strided_slice %165 {offsets = [0, 32], sizes = [2, 16], strides = [1, 1]} : vector<2x64xf32> to vector<2x16xf32>
    %cst_112 = arith.constant dense<0.000000e+00> : vector<2x16xf32>
    %169 = tpu.matmul %168, %6, %cst_112 {dimension_numbers = #tpu.dot_dimension_numbers<[1], [0], [0], [1], [0, 0, 1, 1], [], []>} : vector<2x16xf32>, vector<16x16xf32>, vector<2x16xf32> -> vector<2x16xf32>
    %170 = vector.extract_strided_slice %165 {offsets = [0, 48], sizes = [2, 16], strides = [1, 1]} : vector<2x64xf32> to vector<2x16xf32>
    %171 = vector.extract_strided_slice %169 {offsets = [0, 0], sizes = [1, 16], strides = [1, 1]} : vector<2x16xf32> to vector<1x16xf32>
    %c1_113 = arith.constant 1 : index
    %c0_114 = arith.constant 0 : index
    %172 = arith.index_cast %0 : i32 to index
    %c0_115 = arith.constant 0 : index
    %173 = vector.load %arg18[%c1_113, %c0_114, %172, %c0_115] : memref<2x2x16x16xf32, #tpu.memory_space<vmem>>, vector<1x1x1x16xf32>
    %174 = vector.shape_cast %173 : vector<1x1x1x16xf32> to vector<1x16xf32>
    %175 = vector.shape_cast %171 : vector<1x16xf32> to vector<1x1x1x16xf32>
    tpu.vector_store %arg18[%c1_113, %c0_114, %172, %c0_115], %175 {strides = array<i32>} : memref<2x2x16x16xf32, #tpu.memory_space<vmem>>, vector<1x1x1x16xf32>,
    %176 = vector.extract_strided_slice %170 {offsets = [0, 0], sizes = [1, 16], strides = [1, 1]} : vector<2x16xf32> to vector<1x16xf32>
    %c1_116 = arith.constant 1 : index
    %c0_117 = arith.constant 0 : index
    %177 = arith.index_cast %0 : i32 to index
    %c0_118 = arith.constant 0 : index
    %178 = vector.load %arg19[%c1_116, %c0_117, %177, %c0_118] : memref<2x2x16x16xf32, #tpu.memory_space<vmem>>, vector<1x1x1x16xf32>
    %179 = vector.shape_cast %178 : vector<1x1x1x16xf32> to vector<1x16xf32>
    %180 = vector.shape_cast %176 : vector<1x16xf32> to vector<1x1x1x16xf32>
    tpu.vector_store %arg19[%c1_116, %c0_117, %177, %c0_118], %180 {strides = array<i32>} : memref<2x2x16x16xf32, #tpu.memory_space<vmem>>, vector<1x1x1x16xf32>,
    %181 = vector.extract_strided_slice %169 {offsets = [1, 0], sizes = [1, 16], strides = [1, 1]} : vector<2x16xf32> to vector<1x16xf32>
    %c1_119 = arith.constant 1 : index
    %c1_120 = arith.constant 1 : index
    %182 = arith.index_cast %0 : i32 to index
    %c0_121 = arith.constant 0 : index
    %183 = vector.load %arg18[%c1_119, %c1_120, %182, %c0_121] : memref<2x2x16x16xf32, #tpu.memory_space<vmem>>, vector<1x1x1x16xf32>
    %184 = vector.shape_cast %183 : vector<1x1x1x16xf32> to vector<1x16xf32>
    %185 = vector.shape_cast %181 : vector<1x16xf32> to vector<1x1x1x16xf32>
    tpu.vector_store %arg18[%c1_119, %c1_120, %182, %c0_121], %185 {strides = array<i32>} : memref<2x2x16x16xf32, #tpu.memory_space<vmem>>, vector<1x1x1x16xf32>,
    %186 = vector.extract_strided_slice %170 {offsets = [1, 0], sizes = [1, 16], strides = [1, 1]} : vector<2x16xf32> to vector<1x16xf32>
    %c1_122 = arith.constant 1 : index
    %c1_123 = arith.constant 1 : index
    %187 = arith.index_cast %0 : i32 to index
    %c0_124 = arith.constant 0 : index
    %188 = vector.load %arg19[%c1_122, %c1_123, %187, %c0_124] : memref<2x2x16x16xf32, #tpu.memory_space<vmem>>, vector<1x1x1x16xf32>
    %189 = vector.shape_cast %188 : vector<1x1x1x16xf32> to vector<1x16xf32>
    %190 = vector.shape_cast %186 : vector<1x16xf32> to vector<1x1x1x16xf32>
    tpu.vector_store %arg19[%c1_122, %c1_123, %187, %c0_124], %190 {strides = array<i32>} : memref<2x2x16x16xf32, #tpu.memory_space<vmem>>, vector<1x1x1x16xf32>,
    %c1_125 = arith.constant 1 : index
    %c0_126 = arith.constant 0 : index
    %c0_127 = arith.constant 0 : index
    %c0_128 = arith.constant 0 : index
    %191 = vector.load %arg18[%c1_125, %c0_126, %c0_127, %c0_128] : memref<2x2x16x16xf32, #tpu.memory_space<vmem>>, vector<1x1x16x16xf32>
    %192 = vector.shape_cast %191 : vector<1x1x16x16xf32> to vector<16x16xf32>
    %c1_129 = arith.constant 1 : index
    %c0_130 = arith.constant 0 : index
    %c0_131 = arith.constant 0 : index
    %c0_132 = arith.constant 0 : index
    %193 = vector.load %arg19[%c1_129, %c0_130, %c0_131, %c0_132] : memref<2x2x16x16xf32, #tpu.memory_space<vmem>>, vector<1x1x16x16xf32>
    %194 = vector.shape_cast %193 : vector<1x1x16x16xf32> to vector<16x16xf32>
    %cst_133 = arith.constant dense<0.000000e+00> : vector<16x32xf32>
    %195 = tpu.matmul %192, %7, %cst_133 {dimension_numbers = #tpu.dot_dimension_numbers<[1], [0], [0], [1], [0, 0, 1, 1], [], []>} : vector<16x16xf32>, vector<16x32xf32>, vector<16x32xf32> -> vector<16x32xf32>
    %cst_134 = arith.constant dense<0.000000e+00> : vector<16x32xf32>
    %196 = tpu.matmul %194, %7, %cst_134 {dimension_numbers = #tpu.dot_dimension_numbers<[1], [0], [0], [1], [0, 0, 1, 1], [], []>} : vector<16x16xf32>, vector<16x32xf32>, vector<16x32xf32> -> vector<16x32xf32>
    %197 = vector.extract_strided_slice %167 {offsets = [0, 0], sizes = [1, 32], strides = [1, 1]} : vector<2x32xf32> to vector<1x32xf32>
    %198 = vector.broadcast %197 : vector<1x32xf32> to vector<4x32xf32>
    %199 = arith.mulf %8, %198 : vector<4x32xf32>
    %cst_135 = arith.constant dense<0.000000e+00> : vector<4x16xf32>
    %200 = tpu.matmul %199, %195, %cst_135 {dimension_numbers = #tpu.dot_dimension_numbers<[1], [1], [0], [0], [0, 0, 1, 0], [], []>} : vector<4x32xf32>, vector<16x32xf32>, vector<4x16xf32> -> vector<4x16xf32>
    %cst_136 = arith.constant 0.353553385 : f32
    %201 = vector.broadcast %cst_136 : f32 to vector<4x16xf32>
    %202 = arith.mulf %200, %201 : vector<4x16xf32>
    %203 = tpu.iota {dimensions = array<i32: 1>} : vector<4x16xi32>
    %204 = vector.broadcast %0 : i32 to vector<4x16xi32>
    %205 = arith.cmpi sle, %203, %204 : vector<4x16xi32>
    %cst_137 = arith.constant -1.000000e+30 : f32
    %206 = vector.broadcast %cst_137 : f32 to vector<4x16xf32>
    %207 = arith.select %205, %202, %206 : vector<4x16xi1>, vector<4x16xf32>
    %cst_138 = arith.constant dense<0xFF800000> : vector<4xf32>
    %208 = vector.multi_reduction <maximumf>, %207, %cst_138 [1] : vector<4x16xf32> to vector<4xf32>
    %209 = vector.shape_cast %208 : vector<4xf32> to vector<4x1xf32>
    %210 = vector.broadcast %209 : vector<4x1xf32> to vector<4x16xf32>
    %211 = arith.subf %207, %210 : vector<4x16xf32>
    %212 = math.exp %211 : vector<4x16xf32>
    %cst_139 = arith.constant dense<0.000000e+00> : vector<4xf32>
    %213 = vector.multi_reduction <add>, %212, %cst_139 [1] : vector<4x16xf32> to vector<4xf32>
    %214 = vector.shape_cast %213 : vector<4xf32> to vector<4x1xf32>
    %215 = tpu.reciprocal %214 {approx = true} : vector<4x1xf32> -> vector<4x1xf32>
    %216 = vector.broadcast %215 : vector<4x1xf32> to vector<4x16xf32>
    %217 = arith.mulf %212, %216 : vector<4x16xf32>
    %cst_140 = arith.constant dense<0.000000e+00> : vector<4x32xf32>
    %218 = tpu.matmul %217, %196, %cst_140 {dimension_numbers = #tpu.dot_dimension_numbers<[1], [0], [0], [1], [0, 0, 1, 1], [], []>} : vector<4x16xf32>, vector<16x32xf32>, vector<4x32xf32> -> vector<4x32xf32>
    %219 = arith.mulf %218, %8 : vector<4x32xf32>
    %cst_141 = arith.constant dense<0.000000e+00> : vector<32xf32>
    %220 = vector.multi_reduction <add>, %219, %cst_141 [0] : vector<4x32xf32> to vector<32xf32>
    %221 = vector.shape_cast %220 : vector<32xf32> to vector<1x32xf32>
    %c1_142 = arith.constant 1 : index
    %c1_143 = arith.constant 1 : index
    %c0_144 = arith.constant 0 : index
    %c0_145 = arith.constant 0 : index
    %222 = vector.load %arg18[%c1_142, %c1_143, %c0_144, %c0_145] : memref<2x2x16x16xf32, #tpu.memory_space<vmem>>, vector<1x1x16x16xf32>
    %223 = vector.shape_cast %222 : vector<1x1x16x16xf32> to vector<16x16xf32>
    %c1_146 = arith.constant 1 : index
    %c1_147 = arith.constant 1 : index
    %c0_148 = arith.constant 0 : index
    %c0_149 = arith.constant 0 : index
    %224 = vector.load %arg19[%c1_146, %c1_147, %c0_148, %c0_149] : memref<2x2x16x16xf32, #tpu.memory_space<vmem>>, vector<1x1x16x16xf32>
    %225 = vector.shape_cast %224 : vector<1x1x16x16xf32> to vector<16x16xf32>
    %cst_150 = arith.constant dense<0.000000e+00> : vector<16x32xf32>
    %226 = tpu.matmul %223, %7, %cst_150 {dimension_numbers = #tpu.dot_dimension_numbers<[1], [0], [0], [1], [0, 0, 1, 1], [], []>} : vector<16x16xf32>, vector<16x32xf32>, vector<16x32xf32> -> vector<16x32xf32>
    %cst_151 = arith.constant dense<0.000000e+00> : vector<16x32xf32>
    %227 = tpu.matmul %225, %7, %cst_151 {dimension_numbers = #tpu.dot_dimension_numbers<[1], [0], [0], [1], [0, 0, 1, 1], [], []>} : vector<16x16xf32>, vector<16x32xf32>, vector<16x32xf32> -> vector<16x32xf32>
    %228 = vector.extract_strided_slice %167 {offsets = [1, 0], sizes = [1, 32], strides = [1, 1]} : vector<2x32xf32> to vector<1x32xf32>
    %229 = vector.broadcast %228 : vector<1x32xf32> to vector<4x32xf32>
    %230 = arith.mulf %8, %229 : vector<4x32xf32>
    %cst_152 = arith.constant dense<0.000000e+00> : vector<4x16xf32>
    %231 = tpu.matmul %230, %226, %cst_152 {dimension_numbers = #tpu.dot_dimension_numbers<[1], [1], [0], [0], [0, 0, 1, 0], [], []>} : vector<4x32xf32>, vector<16x32xf32>, vector<4x16xf32> -> vector<4x16xf32>
    %cst_153 = arith.constant 0.353553385 : f32
    %232 = vector.broadcast %cst_153 : f32 to vector<4x16xf32>
    %233 = arith.mulf %231, %232 : vector<4x16xf32>
    %234 = tpu.iota {dimensions = array<i32: 1>} : vector<4x16xi32>
    %235 = vector.broadcast %0 : i32 to vector<4x16xi32>
    %236 = arith.cmpi sle, %234, %235 : vector<4x16xi32>
    %cst_154 = arith.constant -1.000000e+30 : f32
    %237 = vector.broadcast %cst_154 : f32 to vector<4x16xf32>
    %238 = arith.select %236, %233, %237 : vector<4x16xi1>, vector<4x16xf32>
    %cst_155 = arith.constant dense<0xFF800000> : vector<4xf32>
    %239 = vector.multi_reduction <maximumf>, %238, %cst_155 [1] : vector<4x16xf32> to vector<4xf32>
    %240 = vector.shape_cast %239 : vector<4xf32> to vector<4x1xf32>
    %241 = vector.broadcast %240 : vector<4x1xf32> to vector<4x16xf32>
    %242 = arith.subf %238, %241 : vector<4x16xf32>
    %243 = math.exp %242 : vector<4x16xf32>
    %cst_156 = arith.constant dense<0.000000e+00> : vector<4xf32>
    %244 = vector.multi_reduction <add>, %243, %cst_156 [1] : vector<4x16xf32> to vector<4xf32>
    %245 = vector.shape_cast %244 : vector<4xf32> to vector<4x1xf32>
    %246 = tpu.reciprocal %245 {approx = true} : vector<4x1xf32> -> vector<4x1xf32>
    %247 = vector.broadcast %246 : vector<4x1xf32> to vector<4x16xf32>
    %248 = arith.mulf %243, %247 : vector<4x16xf32>
    %cst_157 = arith.constant dense<0.000000e+00> : vector<4x32xf32>
    %249 = tpu.matmul %248, %227, %cst_157 {dimension_numbers = #tpu.dot_dimension_numbers<[1], [0], [0], [1], [0, 0, 1, 1], [], []>} : vector<4x16xf32>, vector<16x32xf32>, vector<4x32xf32> -> vector<4x32xf32>
    %250 = arith.mulf %249, %8 : vector<4x32xf32>
    %cst_158 = arith.constant dense<0.000000e+00> : vector<32xf32>
    %251 = vector.multi_reduction <add>, %250, %cst_158 [0] : vector<4x32xf32> to vector<32xf32>
    %252 = vector.shape_cast %251 : vector<32xf32> to vector<1x32xf32>
    %253 = tpu.concatenate %221, %252 in 0 : vector<1x32xf32>, vector<1x32xf32> -> vector<2x32xf32>
    %c1_159 = arith.constant 1 : index
    %c0_160 = arith.constant 0 : index
    %c0_161 = arith.constant 0 : index
    %254 = vector.load %arg7[%c1_159, %c0_160, %c0_161] : memref<2x32x32xf32, #tpu.memory_space<vmem>>, vector<1x32x32xf32>
    %255 = vector.shape_cast %254 : vector<1x32x32xf32> to vector<32x32xf32>
    %cst_162 = arith.constant dense<0.000000e+00> : vector<2x32xf32>
    %256 = tpu.matmul %253, %255, %cst_162 {dimension_numbers = #tpu.dot_dimension_numbers<[1], [0], [0], [1], [0, 0, 1, 1], [], []>} : vector<2x32xf32>, vector<32x32xf32>, vector<2x32xf32> -> vector<2x32xf32>
    %257 = arith.addf %148, %256 : vector<2x32xf32>
    %c1_163 = arith.constant 1 : index
    %c0_164 = arith.constant 0 : index
    %c0_165 = arith.constant 0 : index
    %258 = vector.load %arg11[%c1_163, %c0_164, %c0_165] : memref<2x1x32xf32, #tpu.memory_space<vmem>>, vector<1x1x32xf32>
    %259 = vector.shape_cast %258 : vector<1x1x32xf32> to vector<1x32xf32>
    %260 = arith.mulf %257, %257 : vector<2x32xf32>
    %cst_166 = arith.constant dense<0.000000e+00> : vector<2xf32>
    %261 = vector.multi_reduction <add>, %260, %cst_166 [1] : vector<2x32xf32> to vector<2xf32>
    %262 = vector.shape_cast %261 : vector<2xf32> to vector<2x1xf32>
    %cst_167 = arith.constant 3.200000e+01 : f32
    %263 = vector.broadcast %cst_167 : f32 to vector<2x1xf32>
    %264 = arith.divf %262, %263 : vector<2x1xf32>
    %cst_168 = arith.constant 9.99999974E-6 : f32
    %265 = vector.broadcast %cst_168 : f32 to vector<2x1xf32>
    %266 = arith.addf %264, %265 : vector<2x1xf32>
    %267 = math.rsqrt %266 : vector<2x1xf32>
    %268 = vector.broadcast %267 : vector<2x1xf32> to vector<2x32xf32>
    %269 = arith.mulf %257, %268 : vector<2x32xf32>
    %270 = vector.broadcast %259 : vector<1x32xf32> to vector<2x32xf32>
    %271 = arith.mulf %269, %270 : vector<2x32xf32>
    %c1_169 = arith.constant 1 : index
    %c0_170 = arith.constant 0 : index
    %c0_171 = arith.constant 0 : index
    %272 = vector.load %arg8[%c1_169, %c0_170, %c0_171] : memref<2x32x192xf32, #tpu.memory_space<vmem>>, vector<1x32x192xf32>
    %273 = vector.shape_cast %272 : vector<1x32x192xf32> to vector<32x192xf32>
    %cst_172 = arith.constant dense<0.000000e+00> : vector<2x192xf32>
    %274 = tpu.matmul %271, %273, %cst_172 {dimension_numbers = #tpu.dot_dimension_numbers<[1], [0], [0], [1], [0, 0, 1, 1], [], []>} : vector<2x32xf32>, vector<32x192xf32>, vector<2x192xf32> -> vector<2x192xf32>
    %275 = vector.extract_strided_slice %274 {offsets = [0, 0], sizes = [2, 96], strides = [1, 1]} : vector<2x192xf32> to vector<2x96xf32>
    %276 = vector.extract_strided_slice %274 {offsets = [0, 96], sizes = [2, 96], strides = [1, 1]} : vector<2x192xf32> to vector<2x96xf32>
    %277 = arith.negf %275 : vector<2x96xf32>
    %278 = math.exp %277 : vector<2x96xf32>
    %cst_173 = arith.constant 1.000000e+00 : f32
    %279 = vector.broadcast %cst_173 : f32 to vector<2x96xf32>
    %280 = arith.addf %279, %278 : vector<2x96xf32>
    %281 = arith.divf %279, %280 : vector<2x96xf32>
    %282 = arith.mulf %275, %281 : vector<2x96xf32>
    %283 = arith.mulf %282, %276 : vector<2x96xf32>
    %c1_174 = arith.constant 1 : index
    %c0_175 = arith.constant 0 : index
    %c0_176 = arith.constant 0 : index
    %284 = vector.load %arg9[%c1_174, %c0_175, %c0_176] : memref<2x96x32xf32, #tpu.memory_space<vmem>>, vector<1x96x32xf32>
    %285 = vector.shape_cast %284 : vector<1x96x32xf32> to vector<96x32xf32>
    %cst_177 = arith.constant dense<0.000000e+00> : vector<2x32xf32>
    %286 = tpu.matmul %283, %285, %cst_177 {dimension_numbers = #tpu.dot_dimension_numbers<[1], [0], [0], [1], [0, 0, 1, 1], [], []>} : vector<2x96xf32>, vector<96x32xf32>, vector<2x32xf32> -> vector<2x32xf32>
    %287 = arith.addf %257, %286 : vector<2x32xf32>
    %c0_178 = arith.constant 0 : index
    %c0_179 = arith.constant 0 : index
    %288 = vector.load %arg12[%c0_178, %c0_179] : memref<1x32xf32, #tpu.memory_space<vmem>>, vector<1x32xf32>
    %289 = arith.mulf %287, %287 : vector<2x32xf32>
    %cst_180 = arith.constant dense<0.000000e+00> : vector<2xf32>
    %290 = vector.multi_reduction <add>, %289, %cst_180 [1] : vector<2x32xf32> to vector<2xf32>
    %291 = vector.shape_cast %290 : vector<2xf32> to vector<2x1xf32>
    %cst_181 = arith.constant 3.200000e+01 : f32
    %292 = vector.broadcast %cst_181 : f32 to vector<2x1xf32>
    %293 = arith.divf %291, %292 : vector<2x1xf32>
    %cst_182 = arith.constant 9.99999974E-6 : f32
    %294 = vector.broadcast %cst_182 : f32 to vector<2x1xf32>
    %295 = arith.addf %293, %294 : vector<2x1xf32>
    %296 = math.rsqrt %295 : vector<2x1xf32>
    %297 = vector.broadcast %296 : vector<2x1xf32> to vector<2x32xf32>
    %298 = arith.mulf %287, %297 : vector<2x32xf32>
    %299 = vector.broadcast %288 : vector<1x32xf32> to vector<2x32xf32>
    %300 = arith.mulf %298, %299 : vector<2x32xf32>
    %c0_183 = arith.constant 0 : index
    %c0_184 = arith.constant 0 : index
    %301 = vector.load %arg13[%c0_183, %c0_184] : memref<32x128xf32, #tpu.memory_space<vmem>>, vector<32x128xf32>
    %cst_185 = arith.constant dense<0.000000e+00> : vector<2x128xf32>
    %302 = tpu.matmul %300, %301, %cst_185 {dimension_numbers = #tpu.dot_dimension_numbers<[1], [0], [0], [1], [0, 0, 1, 1], [], []>} : vector<2x32xf32>, vector<32x128xf32>, vector<2x128xf32> -> vector<2x128xf32>
    %c0_186 = arith.constant 0 : index
    %c0_187 = arith.constant 0 : index
    %303 = vector.load %arg14[%c0_186, %c0_187] : memref<1x128xf32, #tpu.memory_space<vmem>>, vector<1x128xf32>
    %304 = vector.broadcast %303 : vector<1x128xf32> to vector<2x128xf32>
    %305 = arith.addf %302, %304 : vector<2x128xf32>
    %c0_188 = arith.constant 0 : index
    %c0_189 = arith.constant 0 : index
    %306 = vector.load %arg17[%c0_188, %c0_189] : memref<2x128xf32, #tpu.memory_space<vmem>>, vector<2x128xf32>
    tpu.vector_store %arg17[%c0_188, %c0_189], %305 {strides = array<i32>} : memref<2x128xf32, #tpu.memory_space<vmem>>, vector<2x128xf32>,
    return
  }
}

</mosaic_0001>

<bundles_post_ra>
// kernel: transformer_forward.1
= control target key start
LH: loop header
LB: loop body
LE: loop exit
PB: predicated region body
PF: predicated region fallthrough
CT: control target
= control target key end

     0   :  { %s4059_s0 = inlined_call_operand.<no memory space> [shape: s32[1], index: 0, kind: input, shape index: {}]   ;;  %s4060_s1 = inlined_call_operand.vmem [shape: f32[2,32], index: 1, kind: input, shape index: {}]   ;;  %s4061_s2 = inlined_call_operand.vmem [shape: f32[32,32], index: 2, kind: input, shape index: {}]   ;;  %s4062_s3 = inlined_call_operand.vmem [shape: f32[16,16], index: 3, kind: input, shape index: {}]   ;;  %s4063_s4 = inlined_call_operand.vmem [shape: f32[16,32], index: 4, kind: input, shape index: {}]   ;;  %s4064_s5 = inlined_call_operand.vmem [shape: f32[4,32], index: 5, kind: input, shape index: {}]   ;;  %s4065_s6 = inlined_call_operand.vmem [shape: f32[2,32,64], index: 6, kind: input, shape index: {}]   ;;  %s4066_s7 = inlined_call_operand.vmem [shape: f32[2,32,32], index: 7, kind: input, shape index: {}]   ;;  %s4067_s8 = inlined_call_operand.vmem [shape: f32[2,32,192], index: 8, kind: input, shape index: {}]   ;;  %s4068_s9 = inlined_call_operand.vmem [shape: f32[2,96,32], index: 9, kind: input, shape index: {}]   ;;  %s4069_s10 = inlined_call_operand.vmem [shape: f32[2,1,32], index: 10, kind: input, shape index: {}]   ;;  %s4070_s11 = inlined_call_operand.vmem [shape: f32[2,1,32], index: 11, kind: input, shape index: {}]   ;;  %s4071_s12 = inlined_call_operand.vmem [shape: f32[1,32], index: 12, kind: input, shape index: {}]   ;;  %s4072_s13 = inlined_call_operand.vmem [shape: f32[32,128], index: 13, kind: input, shape index: {}]   ;;  %s4073_s14 = inlined_call_operand.vmem [shape: f32[1,128], index: 14, kind: input, shape index: {}]   ;;  %s4074_s15 = inlined_call_operand.vmem [shape: f32[2,2,16,16], index: 15, kind: input, shape index: {}]   ;;  %s4075_s16 = inlined_call_operand.vmem [shape: f32[2,2,16,16], index: 16, kind: input, shape index: {}]   ;;  %s4076_s17 = inlined_call_operand.hbm [shape: f32[2,128], index: 17, kind: output, shape index: {0}]   ;;  %s4077_s18 = inlined_call_operand.hbm [shape: f32[2,2,16,16], index: 18, kind: output, shape index: {1}]   ;;  %s4078_s19 = inlined_call_operand.hbm [shape: f32[2,2,16,16], index: 19, kind: output, shape index: {2}]  }
   0x1   :  { %4082 = sst [smem:[#allocation10_spill]] %s4059_s0 }
   0x2   :  { %4083 = sst [smem:[#allocation11_spill]] %s4060_s1 }
   0x3   :  { %4084 = sst [smem:[#allocation12_spill]] %s4061_s2 }
   0x4   :  { %4085 = sst [smem:[#allocation13_spill]] %s4062_s3 }
   0x5   :  { %26 = vsyncpa [#allocation4], 0  ;;  %s4086_s20 = sld [smem:[#allocation11_spill]]  ;;  %vm108_vm0 = vcmask 254976  }
   0xb   :  { %v3420_v0 = vld [vmem:[%s4086_s20] sm:$0x3] }
   0xc   :  { %27 = vsyncpa [#allocation6], 0  ;;  %v107_v1 = vmul.f32 %v3420_v0, %v3420_v0  ;;  %v127_v3 = vld [vmem:[%s4065_s6 + $0x18] sm:$0xff]  ;;  %v3307_v4 = vmov 0.0   ;;  %v126_v5 = vld [vmem:[%s4065_s6 + $0x10] sm:$0xff]  ;;  %vm3308_vm1 = vmmov 0   ;;  %v529_v53 = vlaneseq }
   0xd   :  { %2942 = vmatprep.subr.mxu1 %v3307_v4  ;;  %2950 = vmatprep.mubr.msk.f32.mxu1 %vm3308_vm1, %v3307_v4  ;;  %v125_v6 = vld [vmem:[%s4065_s6 + $0x8] sm:$0xff]  ;;  %v124_v7 = vld [vmem:[%s4065_s6] sm:$0xff]  ;;  %vm128_vm2 = vcmask 261120   ;;  %s4087_s0 = sld [smem:[#allocation12_spill]]  ;;  %vm71_vm3 = vcmask 130048   ;;  %v82_v22 = vld [vmem:[%s4075_s16 + $0x10] sm:$0xff] }
   0xe   :  { %v109_v2 = vsel %vm108_vm0, %v107_v1, 0.0  ;;  %2943 = vmatpush3.msra.mxu1 %v127_v3  ;;  %2964 = vmatprep.subr.mxu0 %v3307_v4  ;;  %v2730_v12 = vld [vmem:[%s4069_s10] ss:$0 sm:$0xff]  ;;  %s4088_s25 = sld [smem:[#allocation13_spill]]  ;;  %v81_v21 = vld [vmem:[%s4075_s16 + $0x8] sm:$0xff]  ;;  %v83_v23 = vld [vmem:[%s4075_s16 + $0x18] sm:$0xff] }
   0xf   :  { %110 = vadd.xlane.f32.xlu0 %v109_v2  ;;  %2944 = vmatprep.subr.mxu1 %v3307_v4  ;;  %v80_v20 = vld [vmem:[%s4075_s16] sm:$0xff]  ;;  %v85_v25 = vld [vmem:[%s4075_s16 + $0x28] sm:$0xff]  ;;  %89 = vst.msk [vmem:[#allocation7 + $0x8] sm:$0xff] %vm71_vm3, %v81_v21  ;;  %90 = vst.msk [vmem:[#allocation7 + $0x10] sm:$0xff] %vm71_vm3, %v82_v22  ;;  %vm350_vm4 = vcmask 122880   ;;  %vm359_vm5 = vcmask 123905  }
  0x10   :  { %2968 = vmatprep.mubr.msk.f32.mxu0 %vm3308_vm1, %v3307_v4  ;;  %2945 = vmatpush3.msra.mxu1 %v126_v5  ;;  %v84_v24 = vld [vmem:[%s4075_s16 + $0x20] sm:$0xff]  ;;  %88 = vst.msk [vmem:[#allocation7] sm:$0xff] %vm71_vm3, %v80_v20  ;;  %v86_v26 = vld [vmem:[%s4075_s16 + $0x30] sm:$0xff]  ;;  %v87_v27 = vld [vmem:[%s4075_s16 + $0x38] sm:$0xff]  ;;  %s3309_s16 = smov 80   ;;  %s4089_s2 = sld [smem:[#allocation10_spill]] }
  0x11   :  { %2946 = vmatprep.subr.mxu1 %v3307_v4  ;;  %91 = vst.msk [vmem:[#allocation7 + $0x18] sm:$0xff] %vm71_vm3, %v83_v23  ;;  %92 = vst.msk [vmem:[#allocation7 + $0x20] sm:$0xff] %vm71_vm3, %v84_v24  ;;  %v3529_v29 = vld [vmem:[%s4063_s4 + $0x8] sm:$0xff]  ;;  %v3539_v32 = vld [vmem:[%s4063_s4] sm:$0xff]  ;;  %v3612_v54 = vshrl.u32 %v529_v53, 7  ;;  %v615_v63 = vand.u32 127, %v529_v53 }
  0x12   :  { %2947 = vmatpush3.msra.mxu1 %v125_v6  ;;  %93 = vst.msk [vmem:[#allocation7 + $0x28] sm:$0xff] %vm71_vm3, %v85_v25  ;;  %94 = vst.msk [vmem:[#allocation7 + $0x30] sm:$0xff] %vm71_vm3, %v86_v26  ;;  %v63_v33 = vld [vmem:[%s4074_s15] sm:$0xff]  ;;  %v64_v34 = vld [vmem:[%s4074_s15 + $0x8] sm:$0xff]  ;;  %vm619_vm7 = vcmask 125952   ;;  %vm705_vm8 = vcmask 257024  }
  0x13   :  { %2948 = vmatprep.subr.mxu1 %v3307_v4  ;;  %v3454_v15 = vld [vmem:[%s4087_s0 + $0x18] sm:$0xff]  ;;  %v3460_v16 = vld [vmem:[%s4087_s0 + $0x10] sm:$0xff]  ;;  %v3469_v17 = vld [vmem:[%s4087_s0 + $0x8] sm:$0xff]  ;;  %95 = vst.msk [vmem:[#allocation7 + $0x38] sm:$0xff] %vm71_vm3, %v87_v27  ;;  %v531_v55 = vsub.s32 0, %v3612_v54  ;;  %v883_v27 = vsub.s32 1, %v3612_v54 }
  0x14   :  { %2949 = vmatpush3.msra.mxu1 %v124_v7  ;;  %v3478_v18 = vld [vmem:[%s4087_s0] sm:$0xff]  ;;  %v3484_v19 = vld [vmem:[%s4088_s25 + $0x8] sm:$0xff]  ;;  %v65_v35 = vld [vmem:[%s4074_s15 + $0x10] sm:$0xff]  ;;  %72 = vst.msk [vmem:[#allocation5] sm:$0xff] %vm71_vm3, %v63_v33  ;;  %vm1059_vm9 = vcmask 1040384   ;;  %s3311_s21 = smov 32  }
  0x15   :  { %2953 = vmatprep.subr.mxu1 %v3307_v4  ;;  %2965 = vmatpush3.msra.mxu0 %v3484_v19  ;;  %v3521_v28 = vld [vmem:[%s4088_s25] sm:$0xff]  ;;  %s3310_s25 = smov 96   ;;  %v66_v36 = vld [vmem:[%s4074_s15 + $0x18] sm:$0xff]  ;;  %v68_v38 = vld [vmem:[%s4074_s15 + $0x28] sm:$0xff]  ;;  %73 = vst.msk [vmem:[#allocation5 + $0x8] sm:$0xff] %vm71_vm3, %v64_v34  ;;  %vm1265_vm10 = vcmask 785408  }
  0x16   :  { %2966 = vmatprep.subr.mxu0 %v3307_v4  ;;  %v67_v37 = vld [vmem:[%s4074_s15 + $0x20] sm:$0xff]  ;;  %74 = vst.msk [vmem:[#allocation5 + $0x10] sm:$0xff] %vm71_vm3, %v65_v35  ;;  %v69_v39 = vld [vmem:[%s4074_s15 + $0x30] sm:$0xff]  ;;  %v70_v40 = vld [vmem:[%s4074_s15 + $0x38] sm:$0xff]  ;;  %s3580_s23 = scalar_lea.vmem [#allocation7], %s4089_s2  ;;  %s3600_s4 = scalar_lea.vmem [#allocation5], %s4089_s2  ;;  %v616_v1 = vstv %s4089_s2 }
  0x17   :  { %2967 = vmatpush3.msra.mxu0 %v3521_v28  ;;  %75 = vst.msk [vmem:[#allocation5 + $0x18] sm:$0xff] %vm71_vm3, %v66_v36  ;;  %76 = vst.msk [vmem:[#allocation5 + $0x20] sm:$0xff] %vm71_vm3, %v67_v37  ;;  %v3623_v58 = vld [vmem:[%s4064_s5] sm:$0xf]  ;;  %vm3640_vm6 = vcmp.le.s32.totalorder %v615_v63, %v616_v1  ;;  %v2789_v3 = vld [vmem:[%s4066_s7 + $0x38] sm:$0xff]  ;;  %s3312_s22 = smov [#allocation5]  }
  0x18   :  { %2978 = vmatprep.subr.mxu0 %v3529_v29  ;;  %77 = vst.msk [vmem:[#allocation5 + $0x28] sm:$0xff] %vm71_vm3, %v68_v38  ;;  %78 = vst.msk [vmem:[#allocation5 + $0x30] sm:$0xff] %vm71_vm3, %v69_v39  ;;  %s2686_s2 = sshll.u32 %s3312_s22, 4  ;;  %s2687_s2 = int_to_ptr.vmem [resolvable:$true] %s2686_s2 }
  0x19   :  { %79 = vst.msk [vmem:[#allocation5 + $0x38] sm:$0xff] %vm71_vm3, %v70_v40  ;;  %p3248_p1 = scmp.lt.s32.totalorder %s2687_s2, %s2687_s2 }
  0x98   :  { %v111_v8 = vpop.xlane.xlu0 %110 }
  0x99   :  { %v113_v9 = vmul.f32 0.03125, %v111_v8 }
  0x9b   :  { %v114_v10 = vadd.f32 1e-05, %v113_v9 }
  0x9d   :  { %3209 = vrsqrt.f32 %v114_v10 }
  0xaa   :  { %v3210_v11 = vpop.eup %3209 }
  0xab   :  { %v116_v13 = vmul.f32 %v3210_v11, %v3420_v0 }
  0xad   :  { %v123_v14 = vmul.f32 %v2730_v12, %v116_v13 }
  0xaf   :  { %2951 = vmatmul.mubr.msk.f32.vlgmr.msra.gmra.mxu1 %vm128_vm2, %v123_v14 }
  0xb0   :  { %2954 = vmatpush3.msra.mxu1 %v3454_v15  ;;  %2961 = vmatprep.mubr.msk.f32.mxu1 %vm3308_vm1, %v3307_v4 }
  0xb1   :  { %2955 = vmatprep.subr.mxu1 %v3307_v4 }
  0xb2   :  { %2956 = vmatpush3.msra.mxu1 %v3460_v16 }
  0xb3   :  { %2957 = vmatprep.subr.mxu1 %v3307_v4 }
  0xb4   :  { %2958 = vmatpush3.msra.mxu1 %v3469_v17 }
  0xb5   :  { %2959 = vmatprep.subr.mxu1 %v3307_v4 }
  0xb6   :  { %2960 = vmatpush3.msra.mxu1 %v3478_v18 }
  0xb7   :  { %2971 = vmatprep.subr.mxu1 %v3529_v29 }
 0x16f   :  { %v198_v30 = vpop.f32.mrf.mxu1 }
 0x170   :  { %352 = vrot.lane.b32.xlu1 %v198_v30, %s3309_s16  ;;  %275 = vrot.lane.b32.xlu0 %v198_v30, %s3310_s25 }
 0x171   :  { %2962 = vmatmul.mubr.msk.f32.vlgmr.msra.gmra.mxu1 %vm128_vm2, %v198_v30  ;;  %v2952_v31 = vpop.f32.mrf.mxu1 }
 0x172   :  { %2972 = vmatpush3.msra.mxu1 %v3529_v29 }
 0x173   :  { %2973 = vmatprep.subr.mxu1 %v3539_v32 }
 0x174   :  { %2974 = vmatpush3.msra.mxu1 %v3539_v32 }
 0x175   :  { %2985 = vmatprep.subr.mxu1 %v3307_v4 }
 0x1e2   :  { %v353_v41 = vpop.permute.xlu1 %352  ;;  %v276_v42 = vpop.permute.xlu0 %275 }
 0x1e3   :  { %356 = vst.msk [vmem:[%s3580_s23] sm:$0x1] %vm350_vm4, %v353_v41  ;;  %2969 = vmatmul.mubr.msk.f32.vlgmr.msra.gmra.mxu0 %vm71_vm3, %v276_v42 }
 0x1e4   :  { %2735 = vst.msk [vmem:[%s3580_s23 + $0xf] sm:$0x2] %vm359_vm5, %v353_v41  ;;  %2979 = vmatpush3.msra.mxu0 %v3529_v29 }
 0x1e5   :  { %2980 = vmatprep.subr.mxu0 %v3539_v32 }
 0x1e6   :  { %2981 = vmatpush3.msra.mxu0 %v3539_v32 }
 0x1e7   :  { %2992 = vmatprep.subr.mxu0 %v3307_v4 }
 0x1eb   :  { %v365_v43 = vld [vmem:[#allocation7] sm:$0xff]  ;;  %v366_v44 = vld [vmem:[#allocation7 + $0x8] sm:$0xff]  ;;  %v717_v61 = vld [vmem:[#allocation7 + $0x10] sm:$0xff] }
 0x1ec   :  { %2982 = vmatprep.mubr.msk.f32.mxu0 %vm71_vm3, %v365_v43  ;;  %v718_v62 = vld [vmem:[#allocation7 + $0x18] sm:$0xff] }
 0x1ed   :  { %2983 = vmatmul.mubr.msk.f32.vlgmr.msra.gmra.mxu0 %vm71_vm3, %v366_v44 }
 0x1ee   :  { %2996 = vmatprep.mubr.msk.f32.mxu0 %vm3308_vm1, %v3307_v4 }
 0x231   :  { %v3595_v45 = vpop.f32.mrf.mxu1 }
 0x232   :  { %v532_v57 = vrot.slane %v3595_v45, %v531_v55  ;;  %v884_v33 = vrot.slane %v3595_v45, %v883_v27 }
 0x233   :  { %v2963_v46 = vpop.f32.mrf.mxu1 }
 0x234   :  { %v533_v60 = vmul.f32 %v532_v57, %v3623_v58  ;;  %v885_v35 = vmul.f32 %v884_v33, %v3623_v58  ;;  %v1156_v33 = vld [vmem:[%s4067_s8 + $0x8] sm:$0xff] }
 0x2a3   :  { %v345_v47 = vpop.f32.mrf.mxu0 }
 0x2a4   :  { %351 = vst.msk [vmem:[%s3600_s4] sm:$0x1] %vm350_vm4, %v345_v47 }
 0x2a5   :  { %2734 = vst.msk [vmem:[%s3600_s4 + $0xf] sm:$0x2] %vm359_vm5, %v345_v47  ;;  %v2970_v48 = vpop.f32.mrf.mxu0 }
 0x2ac   :  { %v363_v49 = vld [vmem:[#allocation5] sm:$0xff]  ;;  %v364_v50 = vld [vmem:[#allocation5 + $0x8] sm:$0xff]  ;;  %v714_v24 = vld [vmem:[#allocation5 + $0x10] sm:$0xff] }
 0x2ad   :  { %2975 = vmatprep.mubr.msk.f32.mxu1 %vm71_vm3, %v363_v49  ;;  %v2984_v51 = vpop.f32.mrf.mxu0  ;;  %v715_v25 = vld [vmem:[#allocation5 + $0x18] sm:$0xff] }
 0x2ae   :  { %2976 = vmatmul.mubr.msk.f32.vlgmr.msra.gmra.mxu1 %vm71_vm3, %v364_v50  ;;  %2993 = vmatpush3.msra.mxu0 %v2984_v51  ;;  %v1064_v49 = vld [vmem:[%s4066_s7 + $0x18] sm:$0xff]  ;;  %v1063_v50 = vld [vmem:[%s4066_s7 + $0x10] sm:$0xff]  ;;  %v1062_v51 = vld [vmem:[%s4066_s7 + $0x8] sm:$0xff] }
 0x2af   :  { %v520_v52 = vpop.f32.mrf.mxu0  ;;  %2994 = vmatprep.subr.mxu0 %v3307_v4  ;;  %2989 = vmatprep.mubr.msk.f32.mxu1 %vm3308_vm1, %v3307_v4 }
 0x2b0   :  { %2995 = vmatpush3.msra.mxu0 %v520_v52  ;;  %v1061_v52 = vld [vmem:[%s4066_s7] sm:$0xff] }
 0x2b1   :  { %2999 = vmatprep.subr.mxu0 %v3529_v29 }
 0x36e   :  { %v2977_v56 = vpop.f32.mrf.mxu1 }
 0x36f   :  { %2986 = vmatpush3.xpose.msk.msra.mxu1 %vm128_vm2, %v2977_v56 }
 0x370   :  { %2987 = vmatprep.subr.mxu1 %v3307_v4  ;;  %v439_v59 = vpop.f32.mrf.mxu1 }
 0x373   :  { %2988 = vmatpush3.xpose.msk.msra.mxu1 %vm128_vm2, %v439_v59 }
 0x374   :  { %3006 = vmatprep.subr.mxu1 %v3529_v29 }
 0x376   :  { %2990 = vmatmul.mubr.msk.f32.vlgmr.msra.gmra.mxu1 %vm128_vm2, %v533_v60 }
 0x377   :  { %3007 = vmatpush3.msra.mxu1 %v3529_v29  ;;  %3010 = vmatprep.mubr.msk.f32.mxu1 %vm71_vm3, %v717_v61 }
 0x378   :  { %3008 = vmatprep.subr.mxu1 %v3539_v32 }
 0x379   :  { %3009 = vmatpush3.msra.mxu1 %v3539_v32 }
 0x37a   :  { %3011 = vmatmul.mubr.msk.f32.vlgmr.msra.gmra.mxu1 %vm71_vm3, %v718_v62  ;;  %3020 = vmatprep.subr.mxu1 %v3307_v4 }
 0x37b   :  { %3024 = vmatprep.mubr.msk.f32.mxu1 %vm3308_vm1, %v3307_v4 }
 0x436   :  { %v609_v2 = vpop.f32.mrf.mxu1 }
 0x437   :  { %v613_v5 = vmul.f32 0.35355338, %v609_v2 }
 0x438   :  { %v2991_v6 = vpop.f32.mrf.mxu1 }
 0x439   :  { %v618_v7 = vsel %vm3640_vm6, %v613_v5, -1e+30 }
 0x43a   :  { %v3012_v8 = vpop.f32.mrf.mxu1  ;;  %v620_v9 = vsel %vm619_vm7, %v618_v7, -inf }
 0x43b   :  { %621 = vmax.xlane.f32.xlu1 %v620_v9  ;;  %3021 = vmatpush3.msra.mxu1 %v3012_v8 }
 0x43c   :  { %v872_v10 = vpop.f32.mrf.mxu1  ;;  %3022 = vmatprep.subr.mxu1 %v3307_v4 }
 0x43d   :  { %3023 = vmatpush3.msra.mxu1 %v872_v10 }
 0x43e   :  { %3027 = vmatprep.subr.mxu1 %v3307_v4 }
 0x4c4   :  { %v622_v11 = vpop.xlane.xlu1 %621 }
 0x4c5   :  { %v623_v12 = vsub.f32 %v618_v7, %v622_v11 }
 0x4c7   :  { %v624_v13 = vmul.f32 1.442695, %v623_v12 }
 0x4c9   :  { %3211 = vpow2.f32 %v624_v13 }
 0x4d6   :  { %v3212_v14 = vpop.eup %3211 }
 0x4d7   :  { %v626_v20 = vsel %vm619_vm7, %v3212_v14, 0.0 }
 0x4d8   :  { %627 = vadd.xlane.f32.xlu0 %v626_v20 }
 0x561   :  { %v628_v21 = vpop.xlane.xlu0 %627 }
 0x562   :  { %3213 = vrcp.f32 %v628_v21 }
 0x56f   :  { %v3214_v22 = vpop.eup %3213 }
 0x570   :  { %v630_v23 = vmul.f32 %v3214_v22, %v3212_v14 }
 0x572   :  { %2997 = vmatmul.mubr.msk.f32.vlgmr.msra.gmra.mxu0 %vm71_vm3, %v630_v23 }
 0x573   :  { %3000 = vmatpush3.msra.mxu0 %v3529_v29  ;;  %3003 = vmatprep.mubr.msk.f32.mxu0 %vm71_vm3, %v714_v24  ;;  %v1162_v24 = vld [vmem:[%s4067_s8 + $0x38] sm:$0xff] }
 0x574   :  { %3001 = vmatprep.subr.mxu0 %v3539_v32 }
 0x575   :  { %3002 = vmatpush3.msra.mxu0 %v3539_v32 }
 0x576   :  { %3004 = vmatmul.mubr.msk.f32.vlgmr.msra.gmra.mxu0 %vm71_vm3, %v715_v25  ;;  %3013 = vmatprep.subr.mxu0 %v3307_v4  ;;  %v1161_v25 = vld [vmem:[%s4067_s8 + $0x30] sm:$0xff] }
 0x577   :  { %3017 = vmatprep.mubr.msk.f32.mxu0 %vm3308_vm1, %v3307_v4 }
 0x632   :  { %v700_v26 = vpop.f32.mrf.mxu0 }
 0x633   :  { %v704_v53 = vmul.f32 %v700_v26, %v3623_v58  ;;  %v1159_v26 = vld [vmem:[%s4067_s8 + $0x20] sm:$0xff] }
 0x634   :  { %v2998_v30 = vpop.f32.mrf.mxu0 }
 0x635   :  { %v706_v56 = vsel %vm705_vm8, %v704_v53, 0.0  ;;  %v1158_v30 = vld [vmem:[%s4067_s8 + $0x18] sm:$0xff]  ;;  %v1253_v53 = vld [vmem:[%s4068_s9] sm:$0xff] }
 0x636   :  { %v3005_v31 = vpop.f32.mrf.mxu0  ;;  %v707_v57 = vrot.slane %v706_v56, 4 }
 0x637   :  { %3014 = vmatpush3.xpose.msk.msra.mxu0 %vm128_vm2, %v3005_v31  ;;  %v1157_v31 = vld [vmem:[%s4067_s8 + $0x10] sm:$0xff] }
 0x638   :  { %3015 = vmatprep.subr.mxu0 %v3307_v4  ;;  %v791_v34 = vpop.f32.mrf.mxu0  ;;  %v708_v59 = vadd.f32 %v707_v57, %v706_v56 }
 0x63a   :  { %v709_v62 = vrot.slane %v708_v59, 2 }
 0x63b   :  { %3016 = vmatpush3.xpose.msk.msra.mxu0 %vm128_vm2, %v791_v34  ;;  %v1155_v34 = vld [vmem:[%s4067_s8] sm:$0xff] }
 0x63c   :  { %v710_v5 = vadd.f32 %v709_v62, %v708_v59  ;;  %1190 = vmatprep.subr.mxu0 %v1162_v24 }
 0x63e   :  { %3018 = vmatmul.mubr.msk.f32.vlgmr.msra.gmra.mxu0 %vm128_vm2, %v885_v35  ;;  %v711_v8 = vrot.slane %v710_v5, 1 }
 0x63f   :  { %1230 = vmatprep.mubr.f32.mxu0 %v3307_v4  ;;  %1191 = vmatpush1.msra.mxu0 %v1161_v25  ;;  %v2758_v25 = vld [vmem:[%s4069_s10 + $0x1] ss:$0 sm:$0xff] }
 0x640   :  { %v712_v11 = vadd.f32 %v711_v8, %v710_v5 }
 0x6fe   :  { %v961_v36 = vpop.f32.mrf.mxu0 }
 0x6ff   :  { %v965_v37 = vmul.f32 0.35355338, %v961_v36 }
 0x700   :  { %v3019_v38 = vpop.f32.mrf.mxu0 }
 0x701   :  { %v966_v39 = vsel %vm3640_vm6, %v965_v37, -1e+30 }
 0x702   :  { %v967_v40 = vsel %vm619_vm7, %v966_v39, -inf }
 0x703   :  { %968 = vmax.xlane.f32.xlu1 %v967_v40 }
 0x78c   :  { %v969_v41 = vpop.xlane.xlu1 %968 }
 0x78d   :  { %v970_v42 = vsub.f32 %v966_v39, %v969_v41  ;;  %v2753_v39 = vld [vmem:[%s4070_s11] ss:$0 sm:$0xff] }
 0x78f   :  { %v971_v43 = vmul.f32 1.442695, %v970_v42  ;;  %v1264_v42 = vld [vmem:[%s4068_s9 + $0x58] sm:$0xff] }
 0x791   :  { %3215 = vpow2.f32 %v971_v43  ;;  %v1263_v43 = vld [vmem:[%s4068_s9 + $0x50] sm:$0xff] }
 0x79e   :  { %v3216_v44 = vpop.eup %3215 }
 0x79f   :  { %v973_v45 = vsel %vm619_vm7, %v3216_v44, 0.0 }
 0x7a0   :  { %974 = vadd.xlane.f32.xlu1 %v973_v45  ;;  %v1261_v45 = vld [vmem:[%s4068_s9 + $0x40] sm:$0xff] }
 0x829   :  { %v975_v46 = vpop.xlane.xlu1 %974 }
 0x82a   :  { %3217 = vrcp.f32 %v975_v46  ;;  %v1260_v46 = vld [vmem:[%s4068_s9 + $0x38] sm:$0xff] }
 0x837   :  { %v3218_v47 = vpop.eup %3217 }
 0x838   :  { %v977_v48 = vmul.f32 %v3218_v47, %v3216_v44  ;;  %v1262_v44 = vld [vmem:[%s4068_s9 + $0x48] sm:$0xff]  ;;  %v1259_v47 = vld [vmem:[%s4068_s9 + $0x30] sm:$0xff] }
 0x83a   :  { %3025 = vmatmul.mubr.msk.f32.vlgmr.msra.gmra.mxu1 %vm71_vm3, %v977_v48  ;;  %v1258_v48 = vld [vmem:[%s4068_s9 + $0x28] sm:$0xff] }
 0x83b   :  { %3035 = vmatprep.mubr.msk.f32.mxu1 %vm3308_vm1, %v3307_v4  ;;  %3028 = vmatpush3.msra.mxu1 %v1064_v49  ;;  %v1257_v49 = vld [vmem:[%s4068_s9 + $0x20] sm:$0xff] }
 0x83c   :  { %3029 = vmatprep.subr.mxu1 %v3307_v4 }
 0x83d   :  { %3030 = vmatpush3.msra.mxu1 %v1063_v50  ;;  %v1256_v50 = vld [vmem:[%s4068_s9 + $0x18] sm:$0xff] }
 0x83e   :  { %3031 = vmatprep.subr.mxu1 %v3307_v4 }
 0x83f   :  { %3032 = vmatpush3.msra.mxu1 %v1062_v51  ;;  %v1255_v51 = vld [vmem:[%s4068_s9 + $0x10] sm:$0xff] }
 0x840   :  { %3033 = vmatprep.subr.mxu1 %v3307_v4 }
 0x841   :  { %3034 = vmatpush3.msra.mxu1 %v1061_v52  ;;  %v1254_v52 = vld [vmem:[%s4068_s9 + $0x8] sm:$0xff] }
 0x842   :  { %3038 = vmatprep.subr.mxu1 %v3307_v4 }
 0x8fa   :  { %v1047_v60 = vpop.f32.mrf.mxu1 }
 0x8fb   :  { %v1051_v61 = vmul.f32 %v1047_v60, %v3623_v58 }
 0x8fc   :  { %v3026_v63 = vpop.f32.mrf.mxu1 }
 0x8fd   :  { %v1052_v1 = vsel %vm705_vm8, %v1051_v61, 0.0 }
 0x8fe   :  { %v1053_v2 = vrot.slane %v1052_v1, 4 }
 0x900   :  { %v1054_v6 = vadd.f32 %v1053_v2, %v1052_v1 }
 0x902   :  { %v1055_v7 = vrot.slane %v1054_v6, 2 }
 0x904   :  { %v1056_v9 = vadd.f32 %v1055_v7, %v1054_v6 }
 0x906   :  { %v1057_v10 = vrot.slane %v1056_v9, 1 }
 0x908   :  { %v1058_v12 = vadd.f32 %v1057_v10, %v1056_v9 }
 0x90a   :  { %v1060_v13 = vsel %vm1059_vm9, %v712_v11, %v1058_v12  ;;  %v2762_v12 = vld [vmem:[%s4065_s6 + $0x38] sm:$0xff] }
 0x90b   :  { %3036 = vmatmul.mubr.msk.f32.vlgmr.msra.gmra.mxu1 %vm128_vm2, %v1060_v13  ;;  %v2761_v13 = vld [vmem:[%s4065_s6 + $0x30] sm:$0xff] }
 0x90c   :  { %3062 = vmatprep.mubr.msk.f32.mxu1 %vm3308_vm1, %v3307_v4  ;;  %3039 = vmatpush3.msra.mxu1 %v1264_v42 }
 0x90d   :  { %3040 = vmatprep.subr.mxu1 %v3307_v4 }
 0x90e   :  { %3041 = vmatpush3.msra.mxu1 %v1263_v43 }
 0x90f   :  { %3042 = vmatprep.subr.mxu1 %v3307_v4 }
 0x910   :  { %3043 = vmatpush3.msra.mxu1 %v1262_v44 }
 0x911   :  { %3044 = vmatprep.subr.mxu1 %v3307_v4 }
 0x912   :  { %3045 = vmatpush3.msra.mxu1 %v1261_v45 }
 0x913   :  { %3046 = vmatprep.subr.mxu1 %v3307_v4 }
 0x914   :  { %3047 = vmatpush3.msra.mxu1 %v1260_v46 }
 0x915   :  { %3048 = vmatprep.subr.mxu1 %v3307_v4 }
 0x916   :  { %3049 = vmatpush3.msra.mxu1 %v1259_v47 }
 0x917   :  { %3050 = vmatprep.subr.mxu1 %v3307_v4 }
 0x918   :  { %3051 = vmatpush3.msra.mxu1 %v1258_v48 }
 0x919   :  { %3052 = vmatprep.subr.mxu1 %v3307_v4 }
 0x91a   :  { %3053 = vmatpush3.msra.mxu1 %v1257_v49 }
 0x91b   :  { %3054 = vmatprep.subr.mxu1 %v3307_v4 }
 0x91c   :  { %3055 = vmatpush3.msra.mxu1 %v1256_v50 }
 0x91d   :  { %3056 = vmatprep.subr.mxu1 %v3307_v4 }
 0x91e   :  { %3057 = vmatpush3.msra.mxu1 %v1255_v51 }
 0x91f   :  { %3058 = vmatprep.subr.mxu1 %v3307_v4 }
 0x920   :  { %3059 = vmatpush3.msra.mxu1 %v1254_v52 }
 0x921   :  { %3060 = vmatprep.subr.mxu1 %v3307_v4 }
 0x922   :  { %3061 = vmatpush3.msra.mxu1 %v1253_v53 }
 0x923   :  { %3101 = vmatprep.subr.mxu1 %v3529_v29 }
 0x9cb   :  { %v1134_v14 = vpop.f32.mrf.mxu1 }
 0x9cc   :  { %v3701_v20 = vadd.f32 %v1134_v14, %v3420_v0  ;;  %v1160_v0 = vld [vmem:[%s4067_s8 + $0x28] sm:$0xff] }
 0x9cd   :  { %v3037_v21 = vpop.f32.mrf.mxu1  ;;  %1192 = vmatprep.subr.mxu0 %v1160_v0  ;;  %v2760_v14 = vld [vmem:[%s4065_s6 + $0x28] sm:$0xff] }
 0x9ce   :  { %v1140_v22 = vmul.f32 %v3701_v20, %v3701_v20  ;;  %1193 = vmatpush1.msra.mxu0 %v1159_v26 }
 0x9cf   :  { %1194 = vmatprep.subr.mxu0 %v1158_v30 }
 0x9d0   :  { %v1141_v23 = vsel %vm108_vm0, %v1140_v22, 0.0  ;;  %1195 = vmatpush1.msra.mxu0 %v1157_v31 }
 0x9d1   :  { %1142 = vadd.xlane.f32.xlu1 %v1141_v23  ;;  %1196 = vmatprep.subr.mxu0 %v1156_v33 }
 0x9d2   :  { %1197 = vmatpush1.msra.mxu0 %v1155_v34 }
 0x9d3   :  { %3065 = vmatprep.subr.mxu0 %v3307_v4 }
 0xa5a   :  { %v1143_v35 = vpop.xlane.xlu1 %1142 }
 0xa5b   :  { %v1144_v36 = vmul.f32 0.03125, %v1143_v35 }
 0xa5d   :  { %v1145_v37 = vadd.f32 1e-05, %v1144_v36 }
 0xa5f   :  { %3219 = vrsqrt.f32 %v1145_v37 }
 0xa6c   :  { %v3220_v38 = vpop.eup %3219 }
 0xa6d   :  { %v1147_v40 = vmul.f32 %v3220_v38, %v3701_v20 }
 0xa6f   :  { %v1154_v41 = vmul.f32 %v2753_v39, %v1147_v40 }
 0xa71   :  { %2754 = vmatmul.mubr.msk.f32.vlgmr.msra.gmra.mxu0 %vm128_vm2, %v1154_v41 }
 0xa72   :  { %3073 = vmatprep.mubr.msk.f32.mxu0 %vm3308_vm1, %v3307_v4  ;;  %3066 = vmatpush3.msra.mxu0 %v2762_v12 }
 0xa73   :  { %3067 = vmatprep.subr.mxu0 %v3307_v4 }
 0xa74   :  { %3068 = vmatpush3.msra.mxu0 %v2761_v13 }
 0xa75   :  { %3069 = vmatprep.subr.mxu0 %v3307_v4 }
 0xa76   :  { %3070 = vmatpush3.msra.mxu0 %v2760_v14 }
 0xa77   :  { %3071 = vmatprep.subr.mxu0 %v3307_v4 }
 0xb31   :  { %v1232_v56 = vpop.f32.mrf.mxu0 }
 0xb32   :  { %1246 = vrot.lane.b32.xlu1 %v1232_v56, %s3311_s21  ;;  %v2755_v59 = vmul.f32 -1.442695, %v1232_v56 }
 0xb33   :  { %v1234_v57 = vpop.f32.mrf.mxu0 }
 0xb34   :  { %1248 = vrot.lane.b32.xlu0 %v1234_v57, %s3311_s21  ;;  %3221 = vpow2.f32 %v2755_v59 }
 0xb41   :  { %v3222_v60 = vpop.eup %3221 }
 0xb42   :  { %v1240_v61 = vadd.f32 1.0, %v3222_v60 }
 0xb44   :  { %3223 = vrcp.f32 %v1240_v61 }
 0xb51   :  { %v3224_v62 = vpop.eup %3223 }
 0xb52   :  { %v1243_v63 = vmul.f32 %v3224_v62, %v1232_v56 }
 0xba4   :  { %v1247_v1 = vpop.permute.xlu1 %1246 }
 0xba6   :  { %v1249_v2 = vpop.permute.xlu0 %1248 }
 0xba7   :  { %v1250_v5 = vsel %vm128_vm2, %v1247_v1, %v1249_v2 }
 0xba8   :  { %v1252_v6 = vmul.f32 %v1250_v5, %v1243_v63 }
 0xbaa   :  { %3063 = vmatmul.mubr.msk.f32.vlgmr.msra.gmra.mxu1 %vm1265_vm10, %v1252_v6 }
 0xbab   :  { %3102 = vmatpush3.msra.mxu1 %v3529_v29 }
 0xbac   :  { %3103 = vmatprep.subr.mxu1 %v3539_v32 }
 0xbad   :  { %3104 = vmatpush3.msra.mxu1 %v3539_v32 }
 0xbae   :  { %3115 = vmatprep.subr.mxu1 %v3307_v4 }
 0xc6a   :  { %v1335_v7 = vpop.f32.mrf.mxu1 }
 0xc6b   :  { %v3795_v8 = vadd.f32 %v1335_v7, %v3701_v20  ;;  %v2759_v20 = vld [vmem:[%s4065_s6 + $0x20] sm:$0xff] }
 0xc6c   :  { %v3064_v9 = vpop.f32.mrf.mxu1  ;;  %3072 = vmatpush3.msra.mxu0 %v2759_v20 }
 0xc6d   :  { %v1342_v10 = vmul.f32 %v3795_v8, %v3795_v8  ;;  %3076 = vmatprep.subr.mxu0 %v3307_v4 }
 0xc6f   :  { %v1343_v11 = vsel %vm108_vm0, %v1342_v10, 0.0 }
 0xc70   :  { %1344 = vadd.xlane.f32.xlu1 %v1343_v11 }
 0xcf9   :  { %v1345_v21 = vpop.xlane.xlu1 %1344 }
 0xcfa   :  { %v1346_v22 = vmul.f32 0.03125, %v1345_v21 }
 0xcfc   :  { %v1347_v23 = vadd.f32 1e-05, %v1346_v22 }
 0xcfe   :  { %3225 = vrsqrt.f32 %v1347_v23 }
 0xd0b   :  { %v3226_v24 = vpop.eup %3225 }
 0xd0c   :  { %v1349_v0 = vmul.f32 %v3226_v24, %v3795_v8  ;;  %v2788_v24 = vld [vmem:[%s4066_s7 + $0x30] sm:$0xff] }
 0xd0e   :  { %v1356_v26 = vmul.f32 %v2758_v25, %v1349_v0  ;;  %v2787_v25 = vld [vmem:[%s4066_s7 + $0x28] sm:$0xff]  ;;  %v2786_v0 = vld [vmem:[%s4066_s7 + $0x20] sm:$0xff] }
 0xd10   :  { %3074 = vmatmul.mubr.msk.f32.vlgmr.msra.gmra.mxu0 %vm128_vm2, %v1356_v26 }
 0xd11   :  { %3077 = vmatpush3.msra.mxu0 %v3454_v15  ;;  %3084 = vmatprep.mubr.msk.f32.mxu0 %vm3308_vm1, %v3307_v4 }
 0xd12   :  { %3078 = vmatprep.subr.mxu0 %v3307_v4 }
 0xd13   :  { %3079 = vmatpush3.msra.mxu0 %v3460_v16 }
 0xd14   :  { %3080 = vmatprep.subr.mxu0 %v3307_v4 }
 0xd15   :  { %3081 = vmatpush3.msra.mxu0 %v3469_v17 }
 0xd16   :  { %3082 = vmatprep.subr.mxu0 %v3307_v4 }
 0xd17   :  { %3083 = vmatpush3.msra.mxu0 %v3478_v18 }
 0xd18   :  { %3087 = vmatprep.subr.mxu0 %v3307_v4 }
 0xdd0   :  { %v1431_v30 = vpop.f32.mrf.mxu0 }
 0xdd1   :  { %1508 = vrot.lane.b32.xlu0 %v1431_v30, %s3310_s25  ;;  %3085 = vmatmul.mubr.msk.f32.vlgmr.msra.gmra.mxu0 %vm128_vm2, %v1431_v30 }
 0xdd2   :  { %v3075_v15 = vpop.f32.mrf.mxu0  ;;  %3088 = vmatpush3.msra.mxu0 %v3484_v19  ;;  %3091 = vmatprep.mubr.msk.f32.mxu0 %vm3308_vm1, %v3307_v4 }
 0xdd3   :  { %3089 = vmatprep.subr.mxu0 %v3307_v4 }
 0xdd4   :  { %3090 = vmatpush3.msra.mxu0 %v3521_v28 }
 0xdd5   :  { %1585 = vrot.lane.b32.xlu0 %v1431_v30, %s3309_s16  ;;  %3094 = vmatprep.subr.mxu0 %v3529_v29 }
 0xe43   :  { %v1509_v16 = vpop.permute.xlu0 %1508 }
 0xe44   :  { %3092 = vmatmul.mubr.msk.f32.vlgmr.msra.gmra.mxu0 %vm71_vm3, %v1509_v16 }
 0xe45   :  { %3095 = vmatpush3.msra.mxu0 %v3529_v29 }
 0xe46   :  { %3096 = vmatprep.subr.mxu0 %v3539_v32 }
 0xe47   :  { %v1586_v17 = vpop.permute.xlu0 %1585  ;;  %3097 = vmatpush3.msra.mxu0 %v3539_v32 }
 0xe48   :  { %2767 = vst.msk [vmem:[%s3580_s23 + $0x20] sm:$0x1] %vm350_vm4, %v1586_v17  ;;  %3108 = vmatprep.subr.mxu0 %v3307_v4 }
 0xe49   :  { %2769 = vst.msk [vmem:[%s3580_s23 + $0x2f] sm:$0x2] %vm359_vm5, %v1586_v17 }
 0xe50   :  { %v1599_v18 = vld [vmem:[#allocation7 + $0x20] sm:$0xff]  ;;  %v1600_v19 = vld [vmem:[#allocation7 + $0x28] sm:$0xff]  ;;  %v1945_v43 = vld [vmem:[#allocation7 + $0x30] sm:$0xff] }
 0xe51   :  { %3105 = vmatprep.mubr.msk.f32.mxu1 %vm71_vm3, %v1599_v18 }
 0xe52   :  { %3106 = vmatmul.mubr.msk.f32.vlgmr.msra.gmra.mxu1 %vm71_vm3, %v1600_v19 }
 0xe53   :  { %3119 = vmatprep.mubr.msk.f32.mxu1 %vm3308_vm1, %v3307_v4 }
 0xe91   :  { %v3853_v28 = vpop.f32.mrf.mxu0 }
 0xe92   :  { %v1766_v40 = vrot.slane %v3853_v28, %v531_v55  ;;  %v1946_v55 = vld [vmem:[#allocation7 + $0x38] sm:$0xff] }
 0xe93   :  { %v3086_v31 = vpop.f32.mrf.mxu0 }
 0xe94   :  { %v1767_v42 = vmul.f32 %v1766_v40, %v3623_v58 }
 0xf04   :  { %v1578_v33 = vpop.f32.mrf.mxu0 }
 0xf05   :  { %2766 = vst.msk [vmem:[%s3600_s4 + $0x20] sm:$0x1] %vm350_vm4, %v1578_v33 }
 0xf06   :  { %2768 = vst.msk [vmem:[%s3600_s4 + $0x2f] sm:$0x2] %vm359_vm5, %v1578_v33  ;;  %v3093_v34 = vpop.f32.mrf.mxu0 }
 0xf0d   :  { %v1596_v35 = vld [vmem:[#allocation5 + $0x20] sm:$0xff]  ;;  %v1597_v36 = vld [vmem:[#allocation5 + $0x28] sm:$0xff]  ;;  %v1942_v62 = vld [vmem:[#allocation5 + $0x30] sm:$0xff] }
 0xf0e   :  { %3098 = vmatprep.mubr.msk.f32.mxu0 %vm71_vm3, %v1596_v35  ;;  %v1943_v63 = vld [vmem:[#allocation5 + $0x38] sm:$0xff] }
 0xf0f   :  { %3099 = vmatmul.mubr.msk.f32.vlgmr.msra.gmra.mxu0 %vm71_vm3, %v1597_v36 }
 0xf10   :  { %3112 = vmatprep.mubr.msk.f32.mxu0 %vm3308_vm1, %v3307_v4 }
 0xf12   :  { %v3107_v37 = vpop.f32.mrf.mxu1 }
 0xf13   :  { %3116 = vmatpush3.msra.mxu1 %v3107_v37 }
 0xf14   :  { %v1754_v38 = vpop.f32.mrf.mxu1  ;;  %3117 = vmatprep.subr.mxu1 %v3307_v4 }
 0xf15   :  { %3118 = vmatpush3.msra.mxu1 %v1754_v38 }
 0xf16   :  { %3122 = vmatprep.subr.mxu1 %v3529_v29 }
 0xfcf   :  { %v3100_v39 = vpop.f32.mrf.mxu0 }
 0xfd0   :  { %3109 = vmatpush3.xpose.msk.msra.mxu0 %vm128_vm2, %v3100_v39 }
 0xfd1   :  { %3110 = vmatprep.subr.mxu0 %v3307_v4  ;;  %v1673_v41 = vpop.f32.mrf.mxu0 }
 0xfd4   :  { %3111 = vmatpush3.xpose.msk.msra.mxu0 %vm128_vm2, %v1673_v41 }
 0xfd5   :  { %3129 = vmatprep.subr.mxu0 %v3529_v29 }
 0xfd7   :  { %3113 = vmatmul.mubr.msk.f32.vlgmr.msra.gmra.mxu0 %vm128_vm2, %v1767_v42 }
 0xfd8   :  { %3130 = vmatpush3.msra.mxu0 %v3529_v29  ;;  %3133 = vmatprep.mubr.msk.f32.mxu0 %vm71_vm3, %v1945_v43 }
 0xfd9   :  { %3131 = vmatprep.subr.mxu0 %v3539_v32 }
 0xfda   :  { %3132 = vmatpush3.msra.mxu0 %v3539_v32 }
 0xfdb   :  { %3134 = vmatmul.mubr.msk.f32.vlgmr.msra.gmra.mxu0 %vm71_vm3, %v1946_v55  ;;  %3143 = vmatprep.subr.mxu0 %v3307_v4 }
 0xfdc   :  { %3147 = vmatprep.mubr.msk.f32.mxu0 %vm3308_vm1, %v3307_v4 }
0x1097   :  { %v1843_v44 = vpop.f32.mrf.mxu0 }
0x1098   :  { %v1847_v45 = vmul.f32 0.35355338, %v1843_v44 }
0x1099   :  { %v3114_v46 = vpop.f32.mrf.mxu0 }
0x109a   :  { %v1848_v47 = vsel %vm3640_vm6, %v1847_v45, -1e+30  ;;  %v2800_v46 = vld [vmem:[%s4067_s8 + $0x78] sm:$0xff] }
0x109b   :  { %v3135_v48 = vpop.f32.mrf.mxu0  ;;  %v1849_v49 = vsel %vm619_vm7, %v1848_v47, -inf }
0x109c   :  { %1850 = vmax.xlane.f32.xlu0 %v1849_v49  ;;  %3144 = vmatpush3.msra.mxu0 %v3135_v48  ;;  %v2797_v48 = vld [vmem:[%s4067_s8 + $0x60] sm:$0xff]  ;;  %v2796_v49 = vld [vmem:[%s4067_s8 + $0x58] sm:$0xff] }
0x109d   :  { %v2100_v50 = vpop.f32.mrf.mxu0  ;;  %3145 = vmatprep.subr.mxu0 %v3307_v4 }
0x109e   :  { %3146 = vmatpush3.msra.mxu0 %v2100_v50  ;;  %v2795_v50 = vld [vmem:[%s4067_s8 + $0x50] sm:$0xff] }
0x109f   :  { %3150 = vmatprep.subr.mxu0 %v3307_v4 }
0x1125   :  { %v1851_v51 = vpop.xlane.xlu0 %1850 }
0x1126   :  { %v1852_v52 = vsub.f32 %v1848_v47, %v1851_v51  ;;  %v2799_v47 = vld [vmem:[%s4067_s8 + $0x70] sm:$0xff]  ;;  %v2794_v51 = vld [vmem:[%s4067_s8 + $0x48] sm:$0xff] }
0x1128   :  { %v1853_v53 = vmul.f32 1.442695, %v1852_v52  ;;  %v2793_v52 = vld [vmem:[%s4067_s8 + $0x40] sm:$0xff] }
0x112a   :  { %3227 = vpow2.f32 %v1853_v53 }
0x1137   :  { %v3228_v56 = vpop.eup %3227 }
0x1138   :  { %v1855_v57 = vsel %vm619_vm7, %v3228_v56, 0.0 }
0x1139   :  { %1856 = vadd.xlane.f32.xlu1 %v1855_v57 }
0x11c2   :  { %v1857_v59 = vpop.xlane.xlu1 %1856 }
0x11c3   :  { %3229 = vrcp.f32 %v1857_v59 }
0x11d0   :  { %v3230_v60 = vpop.eup %3229 }
0x11d1   :  { %v1859_v61 = vmul.f32 %v3230_v60, %v3228_v56  ;;  %v2792_v60 = vld [vmem:[%s4070_s11 + $0x1] ss:$0 sm:$0xff] }
0x11d3   :  { %3120 = vmatmul.mubr.msk.f32.vlgmr.msra.gmra.mxu1 %vm71_vm3, %v1859_v61 }
0x11d4   :  { %3123 = vmatpush3.msra.mxu1 %v3529_v29  ;;  %3126 = vmatprep.mubr.msk.f32.mxu1 %vm71_vm3, %v1942_v62  ;;  %v2112_v29 = vrot.slane %v3853_v28, %v883_v27 }
0x11d5   :  { %3124 = vmatprep.subr.mxu1 %v3539_v32 }
0x11d6   :  { %3125 = vmatpush3.msra.mxu1 %v3539_v32  ;;  %v2113_v6 = vmul.f32 %v2112_v29, %v3623_v58  ;;  %v2810_v29 = vld [vmem:[%s4068_s9 + $0x98] sm:$0xff] }
0x11d7   :  { %3127 = vmatmul.mubr.msk.f32.vlgmr.msra.gmra.mxu1 %vm71_vm3, %v1943_v63  ;;  %3136 = vmatprep.subr.mxu1 %v3307_v4  ;;  %v2814_v63 = vld [vmem:[%s4068_s9 + $0xb8] sm:$0xff] }
0x11d8   :  { %3140 = vmatprep.mubr.msk.f32.mxu1 %vm3308_vm1, %v3307_v4 }
0x1293   :  { %v1929_v1 = vpop.f32.mrf.mxu1 }
0x1294   :  { %v1933_v26 = vmul.f32 %v1929_v1, %v3623_v58  ;;  %v2813_v1 = vld [vmem:[%s4068_s9 + $0xb0] sm:$0xff] }
0x1295   :  { %v3121_v2 = vpop.f32.mrf.mxu1 }
0x1296   :  { %v1934_v30 = vsel %vm705_vm8, %v1933_v26, 0.0  ;;  %v2812_v2 = vld [vmem:[%s4068_s9 + $0xa8] sm:$0xff] }
0x1297   :  { %v3128_v5 = vpop.f32.mrf.mxu1  ;;  %v1935_v15 = vrot.slane %v1934_v30, 4 }
0x1298   :  { %3137 = vmatpush3.xpose.msk.msra.mxu1 %vm128_vm2, %v3128_v5  ;;  %v2811_v5 = vld [vmem:[%s4068_s9 + $0xa0] sm:$0xff] }
0x1299   :  { %3138 = vmatprep.subr.mxu1 %v3307_v4  ;;  %v2019_v32 = vpop.f32.mrf.mxu1  ;;  %v1936_v16 = vadd.f32 %v1935_v15, %v1934_v30 }
0x129b   :  { %v1937_v19 = vrot.slane %v1936_v16, 2 }
0x129c   :  { %3139 = vmatpush3.xpose.msk.msra.mxu1 %vm128_vm2, %v2019_v32  ;;  %v2809_v32 = vld [vmem:[%s4068_s9 + $0x90] sm:$0xff] }
0x129d   :  { %v1938_v34 = vadd.f32 %v1937_v19, %v1936_v16  ;;  %2420 = vmatprep.subr.mxu1 %v2800_v46  ;;  %v2587_v19 = vld [vmem:[%s4072_s13 + $0x8] sm:$0xff] }
0x129f   :  { %3141 = vmatmul.mubr.msk.f32.vlgmr.msra.gmra.mxu1 %vm128_vm2, %v2113_v6  ;;  %v1939_v37 = vrot.slane %v1938_v34, 1  ;;  %v2808_v6 = vld [vmem:[%s4068_s9 + $0x88] sm:$0xff] }
0x12a0   :  { %2460 = vmatprep.mubr.f32.mxu1 %v3307_v4  ;;  %2421 = vmatpush1.msra.mxu1 %v2799_v47 }
0x12a1   :  { %v1940_v40 = vadd.f32 %v1939_v37, %v1938_v34 }
0x135f   :  { %v2189_v7 = vpop.f32.mrf.mxu1 }
0x1360   :  { %v2193_v9 = vmul.f32 0.35355338, %v2189_v7  ;;  %v2807_v7 = vld [vmem:[%s4068_s9 + $0x80] sm:$0xff] }
0x1361   :  { %v3142_v10 = vpop.f32.mrf.mxu1 }
0x1362   :  { %v2194_v11 = vsel %vm3640_vm6, %v2193_v9, -1e+30  ;;  %v2806_v9 = vld [vmem:[%s4068_s9 + $0x78] sm:$0xff]  ;;  %v2805_v10 = vld [vmem:[%s4068_s9 + $0x70] sm:$0xff] }
0x1363   :  { %v2195_v54 = vsel %vm619_vm7, %v2194_v11, -inf }
0x1364   :  { %2196 = vmax.xlane.f32.xlu1 %v2195_v54  ;;  %v2803_v54 = vld [vmem:[%s4068_s9 + $0x60] sm:$0xff] }
0x13ed   :  { %v2197_v27 = vpop.xlane.xlu1 %2196 }
0x13ee   :  { %v2198_v12 = vsub.f32 %v2194_v11, %v2197_v27  ;;  %v2804_v11 = vld [vmem:[%s4068_s9 + $0x68] sm:$0xff] }
0x13f0   :  { %v2199_v13 = vmul.f32 1.442695, %v2198_v12 }
0x13f2   :  { %3231 = vpow2.f32 %v2199_v13 }
0x13ff   :  { %v3232_v14 = vpop.eup %3231 }
0x1400   :  { %v2201_v20 = vsel %vm619_vm7, %v3232_v14, 0.0 }
0x1401   :  { %2202 = vadd.xlane.f32.xlu1 %v2201_v20 }
0x148a   :  { %v2203_v21 = vpop.xlane.xlu1 %2202 }
0x148b   :  { %3233 = vrcp.f32 %v2203_v21 }
0x1498   :  { %v3234_v22 = vpop.eup %3233 }
0x1499   :  { %v2205_v23 = vmul.f32 %v3234_v22, %v3232_v14 }
0x149b   :  { %3148 = vmatmul.mubr.msk.f32.vlgmr.msra.gmra.mxu0 %vm71_vm3, %v2205_v23 }
0x149c   :  { %3158 = vmatprep.mubr.msk.f32.mxu0 %vm3308_vm1, %v3307_v4  ;;  %3151 = vmatpush3.msra.mxu0 %v2789_v3 }
0x149d   :  { %3152 = vmatprep.subr.mxu0 %v3307_v4 }
0x149e   :  { %3153 = vmatpush3.msra.mxu0 %v2788_v24 }
0x149f   :  { %3154 = vmatprep.subr.mxu0 %v3307_v4 }
0x14a0   :  { %3155 = vmatpush3.msra.mxu0 %v2787_v25 }
0x14a1   :  { %3156 = vmatprep.subr.mxu0 %v3307_v4 }
0x14a2   :  { %3157 = vmatpush3.msra.mxu0 %v2786_v0 }
0x14a3   :  { %3161 = vmatprep.subr.mxu0 %v3307_v4 }
0x155b   :  { %v2275_v17 = vpop.f32.mrf.mxu0 }
0x155c   :  { %v2279_v18 = vmul.f32 %v2275_v17, %v3623_v58  ;;  %v2589_v17 = vld [vmem:[%s4072_s13 + $0x18] sm:$0xff] }
0x155d   :  { %v3149_v28 = vpop.f32.mrf.mxu0 }
0x155e   :  { %v2280_v31 = vsel %vm705_vm8, %v2279_v18, 0.0  ;;  %v2588_v18 = vld [vmem:[%s4072_s13 + $0x10] sm:$0xff]  ;;  %v2586_v28 = vld [vmem:[%s4072_s13] sm:$0xff]  ;;  %s3243_s13 = scalar_lea.vmem %s2687_s2, 1024 }
0x155f   :  { %v2281_v33 = vrot.slane %v2280_v31, 4  ;;  %p3244_p0 = scmp.ne.s32.totalorder %s2687_s2, %s3243_s13  ;;  %p3249_p2 = scmp.lt.s32.totalorder %s3243_s13, %s3243_s13 }
0x1561   :  { %v2282_v35 = vadd.f32 %v2281_v33, %v2280_v31  ;;  %p3250_p3 = por %p3249_p2, %p3248_p1 }
0x1563   :  { %v2283_v36 = vrot.slane %v2282_v35, 2  ;;  %p3251_p4 = pnand %p3250_p3, %p3244_p0 }
0x1565   :  { %v2284_v38 = vadd.f32 %v2283_v36, %v2282_v35  ;;  %v2816_v36 = vld [vmem:[%s4071_s12] ss:$0 sm:$0xff] }
0x1567   :  { %v2285_v39 = vrot.slane %v2284_v38, 1 }
0x1569   :  { %v2286_v41 = vadd.f32 %v2285_v39, %v2284_v38 }
0x156b   :  { %v2287_v42 = vsel %vm1059_vm9, %v1940_v40, %v2286_v41 }
0x156c   :  { %3159 = vmatmul.mubr.msk.f32.vlgmr.msra.gmra.mxu0 %vm128_vm2, %v2287_v42 }
0x156d   :  { %3185 = vmatprep.mubr.msk.f32.mxu0 %vm3308_vm1, %v3307_v4  ;;  %3162 = vmatpush3.msra.mxu0 %v2814_v63 }
0x156e   :  { %3163 = vmatprep.subr.mxu0 %v3307_v4 }
0x156f   :  { %3164 = vmatpush3.msra.mxu0 %v2813_v1 }
0x1570   :  { %3165 = vmatprep.subr.mxu0 %v3307_v4 }
0x1571   :  { %3166 = vmatpush3.msra.mxu0 %v2812_v2 }
0x1572   :  { %3167 = vmatprep.subr.mxu0 %v3307_v4 }
0x1573   :  { %3168 = vmatpush3.msra.mxu0 %v2811_v5 }
0x1574   :  { %3169 = vmatprep.subr.mxu0 %v3307_v4 }
0x1575   :  { %3170 = vmatpush3.msra.mxu0 %v2810_v29 }
0x1576   :  { %3171 = vmatprep.subr.mxu0 %v3307_v4 }
0x1577   :  { %3172 = vmatpush3.msra.mxu0 %v2809_v32 }
0x1578   :  { %3173 = vmatprep.subr.mxu0 %v3307_v4 }
0x1579   :  { %3174 = vmatpush3.msra.mxu0 %v2808_v6 }
0x157a   :  { %3175 = vmatprep.subr.mxu0 %v3307_v4 }
0x157b   :  { %3176 = vmatpush3.msra.mxu0 %v2807_v7 }
0x157c   :  { %3177 = vmatprep.subr.mxu0 %v3307_v4 }
0x157d   :  { %3178 = vmatpush3.msra.mxu0 %v2806_v9 }
0x157e   :  { %3179 = vmatprep.subr.mxu0 %v3307_v4 }
0x157f   :  { %3180 = vmatpush3.msra.mxu0 %v2805_v10 }
0x1580   :  { %3181 = vmatprep.subr.mxu0 %v3307_v4 }
0x1581   :  { %3182 = vmatpush3.msra.mxu0 %v2804_v11 }
0x1582   :  { %3183 = vmatprep.subr.mxu0 %v3307_v4 }
0x1583   :  { %3184 = vmatpush3.msra.mxu0 %v2803_v54 }
0x162c   :  { %v2362_v58 = vpop.f32.mrf.mxu0 }
0x162d   :  { %v3938_v43 = vadd.f32 %v2362_v58, %v3795_v8  ;;  %v2798_v8 = vld [vmem:[%s4067_s8 + $0x68] sm:$0xff] }
0x162e   :  { %v3160_v55 = vpop.f32.mrf.mxu0  ;;  %2422 = vmatprep.subr.mxu1 %v2798_v8 }
0x162f   :  { %v2369_v44 = vmul.f32 %v3938_v43, %v3938_v43  ;;  %2423 = vmatpush1.msra.mxu1 %v2797_v48 }
0x1630   :  { %2424 = vmatprep.subr.mxu1 %v2796_v49 }
0x1631   :  { %v2370_v45 = vsel %vm108_vm0, %v2369_v44, 0.0  ;;  %2425 = vmatpush1.msra.mxu1 %v2795_v50 }
0x1632   :  { %2371 = vadd.xlane.f32.xlu1 %v2370_v45  ;;  %2426 = vmatprep.subr.mxu1 %v2794_v51 }
0x1633   :  { %2427 = vmatpush1.msra.mxu1 %v2793_v52 }
0x1634   :  { %3188 = vmatprep.subr.mxu1 %v3307_v4 }
0x16bb   :  { %v2372_v53 = vpop.xlane.xlu1 %2371 }
0x16bc   :  { %v2373_v56 = vmul.f32 0.03125, %v2372_v53 }
0x16be   :  { %v2374_v57 = vadd.f32 1e-05, %v2373_v56 }
0x16c0   :  { %3235 = vrsqrt.f32 %v2374_v57 }
0x16cd   :  { %v3236_v59 = vpop.eup %3235 }
0x16ce   :  { %v2376_v61 = vmul.f32 %v3236_v59, %v3938_v43 }
0x16d0   :  { %v2383_v62 = vmul.f32 %v2792_v60, %v2376_v61 }
0x16d2   :  { %2801 = vmatmul.mubr.msk.f32.vlgmr.msra.gmra.mxu1 %vm128_vm2, %v2383_v62 }
0x16d3   :  { %3196 = vmatprep.mubr.msk.f32.mxu1 %vm3308_vm1, %v3307_v4  ;;  %3189 = vmatpush3.msra.mxu1 %v2589_v17 }
0x16d4   :  { %3190 = vmatprep.subr.mxu1 %v3307_v4 }
0x16d5   :  { %3191 = vmatpush3.msra.mxu1 %v2588_v18 }
0x16d6   :  { %3192 = vmatprep.subr.mxu1 %v3307_v4 }
0x16d7   :  { %3193 = vmatpush3.msra.mxu1 %v2587_v19 }
0x16d8   :  { %3194 = vmatprep.subr.mxu1 %v3307_v4 }
0x16d9   :  { %3195 = vmatpush3.msra.mxu1 %v2586_v28 }
0x1792   :  { %v2462_v27 = vpop.f32.mrf.mxu1 }
0x1793   :  { %2476 = vrot.lane.b32.xlu0 %v2462_v27, %s3311_s21  ;;  %v2802_v13 = vmul.f32 -1.442695, %v2462_v27 }
0x1794   :  { %v2464_v12 = vpop.f32.mrf.mxu1 }
0x1795   :  { %2478 = vrot.lane.b32.xlu1 %v2464_v12, %s3311_s21  ;;  %3237 = vpow2.f32 %v2802_v13 }
0x17a2   :  { %v3238_v14 = vpop.eup %3237 }
0x17a3   :  { %v2470_v20 = vadd.f32 1.0, %v3238_v14 }
0x17a5   :  { %3239 = vrcp.f32 %v2470_v20 }
0x17b2   :  { %v3240_v21 = vpop.eup %3239 }
0x17b3   :  { %v2473_v22 = vmul.f32 %v3240_v21, %v2462_v27 }
0x1805   :  { %v2477_v23 = vpop.permute.xlu0 %2476 }
0x1807   :  { %v2479_v3 = vpop.permute.xlu1 %2478 }
0x1808   :  { %v2480_v24 = vsel %vm128_vm2, %v2477_v23, %v2479_v3 }
0x1809   :  { %v2482_v25 = vmul.f32 %v2480_v24, %v2473_v22 }
0x180b   :  { %3186 = vmatmul.mubr.msk.f32.vlgmr.msra.gmra.mxu0 %vm1265_vm10, %v2482_v25 }
0x18cb   :  { %v2565_v0 = vpop.f32.mrf.mxu0 }
0x18cc   :  { %v2569_v26 = vadd.f32 %v2565_v0, %v3938_v43 }
0x18cd   :  { %v3187_v30 = vpop.f32.mrf.mxu0 }
0x18ce   :  { %v2571_v15 = vmul.f32 %v2569_v26, %v2569_v26 }
0x18d0   :  { %v2572_v16 = vsel %vm108_vm0, %v2571_v15, 0.0 }
0x18d1   :  { %2573 = vadd.xlane.f32.xlu1 %v2572_v16 }
0x195a   :  { %v2574_v31 = vpop.xlane.xlu1 %2573 }
0x195b   :  { %v2575_v33 = vmul.f32 0.03125, %v2574_v31 }
0x195d   :  { %v2576_v34 = vadd.f32 1e-05, %v2575_v33 }
0x195f   :  { %3241 = vrsqrt.f32 %v2576_v34 }
0x196c   :  { %v3242_v35 = vpop.eup %3241 }
0x196d   :  { %v2578_v37 = vmul.f32 %v3242_v35, %v2569_v26 }
0x196f   :  { %v2585_v38 = vmul.f32 %v2816_v36, %v2578_v37 }
0x1971   :  { %3197 = vmatmul.mubr.msk.f32.vlgmr.msra.gmra.mxu1 %vm128_vm2, %v2585_v38 }
0x1972   :  { %3254 = shalt.err (!%p3251_p4)
}
0x1973   :  { %s3313_s15 = smov 128   ;;  %s3314_s24 = smov 8  }
0x1974   :  { %2692 = dma.vmem_to_hbm [thread:$0]  %s2687_s2, 1024, %s4077_s18, [#allocation6], %s3313_s15, %s3313_s15, %s3314_s24  }
0x1975   :  { %s3315_s12 = smov [#allocation7]  }
0x1976   :  { %s2698_s5 = sshll.u32 %s3315_s12, 4  ;;  %s2699_s5 = int_to_ptr.vmem [resolvable:$true] %s2698_s5 }
0x1977   :  { %s3263_s27 = scalar_lea.vmem %s2699_s5, 1024  ;;  %p3268_p6 = scmp.lt.s32.totalorder %s2699_s5, %s2699_s5 }
0x1978   :  { %p3264_p5 = scmp.ne.s32.totalorder %s2699_s5, %s3263_s27  ;;  %p3269_p7 = scmp.lt.s32.totalorder %s3263_s27, %s3263_s27 }
0x197a   :  { %p3270_p8 = por %p3269_p7, %p3268_p6 }
0x197c   :  { %p3271_p9 = pnand %p3270_p8, %p3264_p5 }
0x197e   :  { %3274 = shalt.err (!%p3271_p9)
}
0x197f   :  { %2704 = dma.vmem_to_hbm [thread:$0]  %s2699_s5, 1024, %s4078_s19, [#allocation6], %s3313_s15, %s3313_s15, %s3314_s24  }
0x1980   :  { %v2817_v4 = vld [vmem:[%s4073_s14] ss:$0 sm:$0xff]  ;;  %s3316_s25 = smov [#allocation3]  }
0x1981   :  { %s2677_s18 = sshll.u32 %s3316_s25, 4  ;;  %s2678_s18 = int_to_ptr.vmem [resolvable:$true] %s2677_s18 }
0x1982   :  { %s3283_s23 = scalar_lea.vmem %s2678_s18, 32  ;;  %p3288_p11 = scmp.lt.s32.totalorder %s2678_s18, %s2678_s18 }
0x1983   :  { %p3284_p10 = scmp.ne.s32.totalorder %s2678_s18, %s3283_s23  ;;  %p3289_p12 = scmp.lt.s32.totalorder %s3283_s23, %s3283_s23 }
0x1985   :  { %p3290_p13 = por %p3289_p12, %p3288_p11 }
0x1987   :  { %p3291_p0 = pnand %p3290_p13, %p3284_p10 }
0x1a31   :  { %v2666_v39 = vpop.f32.mrf.mxu1 }
0x1a32   :  { %v2667_v40 = vadd.f32 %v2817_v4, %v2666_v39 }
0x1a33   :  { %v3198_v41 = vpop.f32.mrf.mxu1 }
0x1a34   :  { %2670 = vst [vmem:[#allocation3] sm:$0x3] %v2667_v40 }
0x1a35   :  { %3294 = shalt.err (!%p3291_p0)
}
0x1a36   :  { %2680 = dma.vmem_to_hbm [thread:$0]  %s2678_s18, 32, %s4076_s17, [#allocation4]  }
0x1a37   :  { %3303 = dma.done.wait [#allocation4], 32  }
0x1a38   :  { %3304 = vsyncadd [#allocation4], 4294967264 }
0x1a39   :  { %3305 = dma.done.wait [#allocation6], 2048  }
0x1a3a   :  { %3306 = vsyncadd [#allocation6], 4294965248 }
0x1a3b   :  { %2714 = vsyncpa [#allocation4], 1 }
0x1a3c   :  { %2715 = vsyncpa [#allocation6], 1 }

</bundles_post_ra>
